<compile_context>
chip_gen: v6e
topology: v6e:2x2x1
jax: 0.10.0
libtpu: 0.0.40
codegen_flags: <defaults>
</compile_context>

<pallas_src>
import numpy as np
import jax
import jax.numpy as jnp
from jax.experimental import pallas as pl
from jax.experimental.pallas import tpu as pltpu

_SUBLANE = 8  # f32 sublane tile; channel dims are padded to this so in-kernel
              # sublane concatenations stay tile aligned.


# ----------------------------------------------------------------------------
# Static geometry helpers (host-side)
# ----------------------------------------------------------------------------
def same_pad_geom(l_in, k, stride):
    """PyTorch MyConv1dPadSame / MyMaxPool1dPadSame SAME-padding geometry."""
    l_out = (l_in + stride - 1) // stride
    p = max(0, (l_out - 1) * stride + k - l_in)
    pad_left = p // 2
    return l_out, pad_left


def selection_matrix(l_in, k, stride):
    """0/1 gather matrix S (l_in, k*l_out): S[j, kk*l_out+t] = 1 iff j == stride*t+kk-pad_left.

    x (C, l_in) @ S performs zero-pad + stride + im2col tap extraction exactly
    (out-of-range taps contribute 0, matching the module's zero padding).
    """
    l_out, pad_left = same_pad_geom(l_in, k, stride)
    s = np.zeros((l_in, k * l_out), np.float32)
    for kk in range(k):
        for t in range(l_out):
            j = stride * t + kk - pad_left
            if 0 <= j < l_in:
                s[j, kk * l_out + t] = 1.0
    return jnp.asarray(s), l_out


# ----------------------------------------------------------------------------
# Parameter folding (BN -> conv/linear weights), done once in the wrapper
# ----------------------------------------------------------------------------
def fold_bn(bn, eps=1e-5):
    gamma, beta, mean, var = bn
    scale = gamma / jnp.sqrt(var + eps)
    bias = beta - mean * scale
    return scale, bias


def prep_conv(w, bn, pad_in_to=None):
    """Fold inference BN into the conv weight, reorder to (C_out, K*C_in).

    In-kernel im2col rows are ordered (tap k major, channel ci minor), so
    W2[co, k*C_in + ci] = w[co, ci, k] * bn_scale[co].
    """
    c_out, c_in, k = w.shape
    if pad_in_to is not None and c_in < pad_in_to:
        w = jnp.pad(w, ((0, 0), (0, pad_in_to - c_in), (0, 0)))
        c_in = pad_in_to
    scale, bias = fold_bn(bn)
    wf = w * scale[:, None, None]
    w2 = jnp.transpose(wf, (0, 2, 1)).reshape(c_out, k * c_in)
    return w2, bias.reshape(c_out, 1)


def prepare_operands(params, l_in, stride_stem=2):
    """Fold BN, build gather matrices, flatten everything into a tuple of kernel operands."""
    ops = []
    # stem: Conv(SAME, k_stem, stride_stem, bias=False) + BN + ReLU, then MaxPool1d(3, 2) SAME
    k_stem = int(params["stem_w"].shape[2])
    c_in = int(params["stem_w"].shape[1])
    c_in_pad = -(-c_in // _SUBLANE) * _SUBLANE
    w, b = prep_conv(params["stem_w"], params["stem_bn"], pad_in_to=c_in_pad)
    s, l = selection_matrix(l_in, k_stem, stride_stem)
    ops += [w, b, s]
    s, l = selection_matrix(l, 3, 2)                      # stem max-pool(3, 2)
    ops += [s]
    # backbone (BasicBlock1d groups, one block per group for layers=[1,1])
    for blk in params["blocks"]:
        k = int(blk["w1"].shape[2])
        stride = blk["stride"]
        w1, b1 = prep_conv(blk["w1"], blk["bn1"])
        s1, l1 = selection_matrix(l, k, stride)
        w2, b2 = prep_conv(blk["w2"], blk["bn2"])
        s2, l2 = selection_matrix(l1, int(blk["w2"].shape[2]), 1)
        wd, bd = prep_conv(blk["down_w"], blk["down_bn"])
        sd, ld = selection_matrix(l, 1, stride)
        assert ld == l1 and l1 == l2
        ops += [w1, b1, s1, w2, b2, s2, wd, bd, sd]
        l = l2
    # head: AdaptiveConcatPool1d -> [BN(2C) -> Linear(2C,16,bias=False) -> ReLU] -> Linear(16,ncls)
    hs, hb = fold_bn(params["head_bn"])
    ops += [hs.reshape(-1, 1), hb.reshape(-1, 1),
            params["head_w1"], params["head_w2"], params["head_b2"].reshape(-1, 1)]
    return tuple(ops)


# ----------------------------------------------------------------------------
# Single fused Pallas kernel for the whole forward pass
# ----------------------------------------------------------------------------
def _full_spec(shape):
    nd = len(shape)
    return pl.BlockSpec(tuple(shape), lambda i, _nd=nd: (0,) * _nd)


def make_kernel(batch, n_blocks):
    def conv_bn(x, w_ref, b_ref, s_ref, relu):
        """SAME-pad Conv1d(bias=False) + folded BN (+ ReLU) for one sample.

        x: (C_in, L_in) f32; w_ref: (C_out, K*C_in); s_ref: (L_in, K*L_out); b_ref: (C_out, 1).
        """
        c_in = x.shape[0]
        k = w_ref.shape[1] // c_in
        l_out = s_ref.shape[1] // k
        # pad + stride + im2col as one MXU gather matmul (exact: 0/1 matrix)
        taps = jnp.dot(x, s_ref[...], preferred_element_type=jnp.float32)      # (C_in, K*L_out)
        if k == 1:
            cols = taps
        else:
            cols = jnp.concatenate(
                [taps[:, i * l_out:(i + 1) * l_out] for i in range(k)], axis=0)  # (K*C_in, L_out)
        y = jnp.dot(w_ref[...], cols, preferred_element_type=jnp.float32) + b_ref[...]
        if relu:
            y = jnp.maximum(y, 0.0)
        return y

    def maxpool_same(x, s_ref, k=3):
        """MyMaxPool1dPadSame (zero padding -> pads may win the max), one sample."""
        l_out = s_ref.shape[1] // k
        taps = jnp.dot(x, s_ref[...], preferred_element_type=jnp.float32)      # (C, K*L_out)
        m = taps[:, 0:l_out]
        for i in range(1, k):
            m = jnp.maximum(m, taps[:, i * l_out:(i + 1) * l_out])
        return m

    def kernel(*refs):
        x_ref = refs[0]
        stem_w, stem_b, stem_s, pool_s = refs[1:5]
        blk_refs = refs[5:5 + 9 * n_blocks]
        h_scale, h_bias, h_w1, h_w2, h_b2 = refs[5 + 9 * n_blocks:10 + 9 * n_blocks]
        out_ref = refs[10 + 9 * n_blocks]

        for b in range(batch):                        # static unroll; everything stays on-chip
            y = x_ref[b].astype(jnp.float32)          # (C_in_pad, L)
            # ---- stem ----
            y = conv_bn(y, stem_w, stem_b, stem_s, relu=True)
            y = maxpool_same(y, pool_s)
            # ---- backbone ----
            for i in range(n_blocks):
                w1, b1, s1, w2, b2, s2, wd, bd, sd = blk_refs[9 * i:9 * i + 9]
                identity = conv_bn(y, wd, bd, sd, relu=False)   # downsample conv + BN
                h = conv_bn(y, w1, b1, s1, relu=True)
                h = conv_bn(h, w2, b2, s2, relu=True)
                y = h + identity                      # residual added AFTER ReLU (as in module)
            # ---- head ----
            l_f = y.shape[1]
            mx = jnp.max(y, axis=1, keepdims=True)                  # (C, 1)
            av = jnp.sum(y, axis=1, keepdims=True) * (1.0 / l_f)    # (C, 1)
            feat = jnp.concatenate([mx, av], axis=0)                # AdaptiveConcatPool1d: [max, mean]
            feat = feat * h_scale[...] + h_bias[...]                # BN(2C) on pooled features (folded)
            hid = jnp.dot(h_w1[...], feat, preferred_element_type=jnp.float32)
            hid = jnp.maximum(hid, 0.0)                             # Linear(2C,16,bias=False) + ReLU
            logits = jnp.dot(h_w2[...], hid, preferred_element_type=jnp.float32) + h_b2[...]
            out_ref[:, b:b + 1] = logits.astype(out_ref.dtype)      # one column per sample

    return kernel


def resnet1d_forward(x, ops):
    """x: (B, C_in, L) -> (B, num_classes). One pallas_call for the whole network."""
    batch, c_in, _ = x.shape
    pad_c = (-c_in) % _SUBLANE
    if pad_c:
        x = jnp.pad(x, ((0, 0), (0, pad_c), (0, 0)))   # keep channel dim sublane-aligned
    num_classes = ops[-1].shape[0]
    n_blocks = (len(ops) - 9) // 9
    all_in = (x,) + tuple(ops)
    out = pl.pallas_call(
        make_kernel(batch, n_blocks),
        out_shape=jax.ShapeDtypeStruct((num_classes, batch), jnp.float32),
        grid=(1,),
        in_specs=[_full_spec(a.shape) for a in all_in],
        out_specs=pl.BlockSpec((num_classes, batch), lambda i: (0, 0)),
        compiler_params=pltpu.CompilerParams(dimension_semantics=("arbitrary",)),
    )(*all_in)
    return out.T


# ----------------------------------------------------------------------------
# Deterministic synthetic parameters (PyTorch layouts: conv (C_out,C_in,K), linear (out,in))
# ----------------------------------------------------------------------------
def make_bn(key, c):
    k1, k2, k3, k4 = jax.random.split(key, 4)
    gamma = 1.0 + 0.1 * jax.random.normal(k1, (c,), jnp.float32)
    beta = 0.1 * jax.random.normal(k2, (c,), jnp.float32)
    mean = 0.1 * jax.random.normal(k3, (c,), jnp.float32)
    var = 1.0 + 0.1 * jnp.abs(jax.random.normal(k4, (c,), jnp.float32))
    return gamma, beta, mean, var


def build_params(key):
    keys = iter(jax.random.split(key, 40))
    nk = lambda: next(keys)
    params = {}
    # stem: Conv(4->8, k=3, s=2, bias=False) + BN(8) + ReLU + MaxPool(3, 2)
    params["stem_w"] = 0.1 * jax.random.normal(nk(), (8, 4, 3), jnp.float32)
    params["stem_bn"] = make_bn(nk(), 8)

    blocks = []
    # group 0: BasicBlock1d(8 -> 8, k=3, s=2), downsample conv(8->8, k=1, s=2)+BN
    blocks.append(dict(
        stride=2,
        w1=0.1 * jax.random.normal(nk(), (8, 8, 3), jnp.float32),
        bn1=make_bn(nk(), 8),
        w2=0.1 * jax.random.normal(nk(), (8, 8, 3), jnp.float32),
        bn2=make_bn(nk(), 8),
        down_w=0.1 * jax.random.normal(nk(), (8, 8, 1), jnp.float32),
        down_bn=make_bn(nk(), 8),
    ))
    # group 1: BasicBlock1d(8 -> 16, k=3, s=2), downsample conv(8->16, k=1, s=2)+BN
    blocks.append(dict(
        stride=2,
        w1=0.1 * jax.random.normal(nk(), (16, 8, 3), jnp.float32),
        bn1=make_bn(nk(), 16),
        w2=0.1 * jax.random.normal(nk(), (16, 16, 3), jnp.float32),
        bn2=make_bn(nk(), 16),
        down_w=0.1 * jax.random.normal(nk(), (16, 8, 1), jnp.float32),
        down_bn=make_bn(nk(), 16),
    ))
    params["blocks"] = blocks

    # head: concat-pool -> 32 feats; LinBnDrop(32,16,bn=True,act=ReLU); LinBnDrop(16,5,bn=False)
    params["head_bn"] = make_bn(nk(), 32)
    params["head_w1"] = 0.1 * jax.random.normal(nk(), (16, 32), jnp.float32)   # Linear(32,16,bias=False)
    params["head_w2"] = 0.1 * jax.random.normal(nk(), (5, 16), jnp.float32)    # Linear(16,5)
    params["head_b2"] = 0.1 * jax.random.normal(nk(), (5,), jnp.float32)
    return params


if __name__ == "__main__":
    key = jax.random.PRNGKey(0)
    kp, kx = jax.random.split(key)
    params = build_params(kp)
    x = jax.random.normal(kx, (2, 4, 64), jnp.float32)    # (batch, channels, length)
    ops = prepare_operands(params, l_in=x.shape[2])
    fwd = jax.jit(resnet1d_forward)
    y = fwd(x, ops)
    jax.block_until_ready(y)
    assert y.shape == (2, 5), y.shape
    assert bool(jnp.all(jnp.isfinite(y)))
    print("KERNEL_OK")
</pallas_src>

<mosaic_0001>
module attributes {stable_mosaic.version = 11 : i64} {
  func.func @kernel(%arg0: i32, %arg1: memref<2x8x64xf32, #tpu.memory_space<vmem>>, %arg2: memref<8x24xf32, #tpu.memory_space<vmem>>, %arg3: memref<8x1xf32, #tpu.memory_space<vmem>>, %arg4: memref<64x96xf32, #tpu.memory_space<vmem>>, %arg5: memref<32x48xf32, #tpu.memory_space<vmem>>, %arg6: memref<8x24xf32, #tpu.memory_space<vmem>>, %arg7: memref<8x1xf32, #tpu.memory_space<vmem>>, %arg8: memref<16x24xf32, #tpu.memory_space<vmem>>, %arg9: memref<8x24xf32, #tpu.memory_space<vmem>>, %arg10: memref<8x1xf32, #tpu.memory_space<vmem>>, %arg11: memref<8x24xf32, #tpu.memory_space<vmem>>, %arg12: memref<8x8xf32, #tpu.memory_space<vmem>>, %arg13: memref<8x1xf32, #tpu.memory_space<vmem>>, %arg14: memref<16x8xf32, #tpu.memory_space<vmem>>, %arg15: memref<16x24xf32, #tpu.memory_space<vmem>>, %arg16: memref<16x1xf32, #tpu.memory_space<vmem>>, %arg17: memref<8x12xf32, #tpu.memory_space<vmem>>, %arg18: memref<16x48xf32, #tpu.memory_space<vmem>>, %arg19: memref<16x1xf32, #tpu.memory_space<vmem>>, %arg20: memref<4x12xf32, #tpu.memory_space<vmem>>, %arg21: memref<16x8xf32, #tpu.memory_space<vmem>>, %arg22: memref<16x1xf32, #tpu.memory_space<vmem>>, %arg23: memref<8x4xf32, #tpu.memory_space<vmem>>, %arg24: memref<32x1xf32, #tpu.memory_space<vmem>>, %arg25: memref<32x1xf32, #tpu.memory_space<vmem>>, %arg26: memref<16x32xf32, #tpu.memory_space<vmem>>, %arg27: memref<5x16xf32, #tpu.memory_space<vmem>>, %arg28: memref<5x1xf32, #tpu.memory_space<vmem>>, %arg29: memref<5x2xf32, #tpu.memory_space<vmem>>) attributes {dimension_semantics = [#tpu.dimension_semantics<arbitrary>], iteration_bounds = array<i64: 1>, scalar_prefetch = 0 : i64, scratch_operands = 0 : i64, tpu.core_type = #tpu.core_type<tc>, window_params = [{pipeline_mode = #tpu.pipeline_mode<synchronous>, transform_indices = @transform_0, window_bounds = array<i64: 2, 8, 64>}, {pipeline_mode = #tpu.pipeline_mode<synchronous>, transform_indices = @transform_1, window_bounds = array<i64: 8, 24>}, {pipeline_mode = #tpu.pipeline_mode<synchronous>, transform_indices = @transform_2, window_bounds = array<i64: 8, 1>}, {pipeline_mode = #tpu.pipeline_mode<synchronous>, transform_indices = @transform_3, window_bounds = array<i64: 64, 96>}, {pipeline_mode = #tpu.pipeline_mode<synchronous>, transform_indices = @transform_4, window_bounds = array<i64: 32, 48>}, {pipeline_mode = #tpu.pipeline_mode<synchronous>, transform_indices = @transform_5, window_bounds = array<i64: 8, 24>}, {pipeline_mode = #tpu.pipeline_mode<synchronous>, transform_indices = @transform_6, window_bounds = array<i64: 8, 1>}, {pipeline_mode = #tpu.pipeline_mode<synchronous>, transform_indices = @transform_7, window_bounds = array<i64: 16, 24>}, {pipeline_mode = #tpu.pipeline_mode<synchronous>, transform_indices = @transform_8, window_bounds = array<i64: 8, 24>}, {pipeline_mode = #tpu.pipeline_mode<synchronous>, transform_indices = @transform_9, window_bounds = array<i64: 8, 1>}, {pipeline_mode = #tpu.pipeline_mode<synchronous>, transform_indices = @transform_10, window_bounds = array<i64: 8, 24>}, {pipeline_mode = #tpu.pipeline_mode<synchronous>, transform_indices = @transform_11, window_bounds = array<i64: 8, 8>}, {pipeline_mode = #tpu.pipeline_mode<synchronous>, transform_indices = @transform_12, window_bounds = array<i64: 8, 1>}, {pipeline_mode = #tpu.pipeline_mode<synchronous>, transform_indices = @transform_13, window_bounds = array<i64: 16, 8>}, {pipeline_mode = #tpu.pipeline_mode<synchronous>, transform_indices = @transform_14, window_bounds = array<i64: 16, 24>}, {pipeline_mode = #tpu.pipeline_mode<synchronous>, transform_indices = @transform_15, window_bounds = array<i64: 16, 1>}, {pipeline_mode = #tpu.pipeline_mode<synchronous>, transform_indices = @transform_16, window_bounds = array<i64: 8, 12>}, {pipeline_mode = #tpu.pipeline_mode<synchronous>, transform_indices = @transform_17, window_bounds = array<i64: 16, 48>}, {pipeline_mode = #tpu.pipeline_mode<synchronous>, transform_indices = @transform_18, window_bounds = array<i64: 16, 1>}, {pipeline_mode = #tpu.pipeline_mode<synchronous>, transform_indices = @transform_19, window_bounds = array<i64: 4, 12>}, {pipeline_mode = #tpu.pipeline_mode<synchronous>, transform_indices = @transform_20, window_bounds = array<i64: 16, 8>}, {pipeline_mode = #tpu.pipeline_mode<synchronous>, transform_indices = @transform_21, window_bounds = array<i64: 16, 1>}, {pipeline_mode = #tpu.pipeline_mode<synchronous>, transform_indices = @transform_22, window_bounds = array<i64: 8, 4>}, {pipeline_mode = #tpu.pipeline_mode<synchronous>, transform_indices = @transform_23, window_bounds = array<i64: 32, 1>}, {pipeline_mode = #tpu.pipeline_mode<synchronous>, transform_indices = @transform_24, window_bounds = array<i64: 32, 1>}, {pipeline_mode = #tpu.pipeline_mode<synchronous>, transform_indices = @transform_25, window_bounds = array<i64: 16, 32>}, {pipeline_mode = #tpu.pipeline_mode<synchronous>, transform_indices = @transform_26, window_bounds = array<i64: 5, 16>}, {pipeline_mode = #tpu.pipeline_mode<synchronous>, transform_indices = @transform_27, window_bounds = array<i64: 5, 1>}, {pipeline_mode = #tpu.pipeline_mode<synchronous>, transform_indices = @transform_28, window_bounds = array<i64: 5, 2>}]} {
    %c0 = arith.constant 0 : index
    %c0_0 = arith.constant 0 : index
    %c0_1 = arith.constant 0 : index
    %0 = vector.load %arg1[%c0, %c0_0, %c0_1] : memref<2x8x64xf32, #tpu.memory_space<vmem>>, vector<1x8x64xf32>
    %1 = vector.shape_cast %0 : vector<1x8x64xf32> to vector<8x64xf32>
    %c0_2 = arith.constant 0 : index
    %c0_3 = arith.constant 0 : index
    %2 = vector.load %arg4[%c0_2, %c0_3] : memref<64x96xf32, #tpu.memory_space<vmem>>, vector<64x96xf32>
    %cst = arith.constant dense<0.000000e+00> : vector<8x96xf32>
    %3 = tpu.matmul %1, %2, %cst {dimension_numbers = #tpu.dot_dimension_numbers<[1], [0], [0], [1], [0, 0, 1, 1], [], []>} : vector<8x64xf32>, vector<64x96xf32>, vector<8x96xf32> -> vector<8x96xf32>
    %4 = vector.extract_strided_slice %3 {offsets = [0, 0], sizes = [8, 32], strides = [1, 1]} : vector<8x96xf32> to vector<8x32xf32>
    %5 = vector.extract_strided_slice %3 {offsets = [0, 32], sizes = [8, 32], strides = [1, 1]} : vector<8x96xf32> to vector<8x32xf32>
    %6 = vector.extract_strided_slice %3 {offsets = [0, 64], sizes = [8, 32], strides = [1, 1]} : vector<8x96xf32> to vector<8x32xf32>
    %7 = tpu.concatenate %4, %5, %6 in 0 : vector<8x32xf32>, vector<8x32xf32>, vector<8x32xf32> -> vector<24x32xf32>
    %c0_4 = arith.constant 0 : index
    %c0_5 = arith.constant 0 : index
    %8 = vector.load %arg2[%c0_4, %c0_5] : memref<8x24xf32, #tpu.memory_space<vmem>>, vector<8x24xf32>
    %cst_6 = arith.constant dense<0.000000e+00> : vector<8x32xf32>
    %9 = tpu.matmul %8, %7, %cst_6 {dimension_numbers = #tpu.dot_dimension_numbers<[1], [0], [0], [1], [0, 0, 1, 1], [], []>} : vector<8x24xf32>, vector<24x32xf32>, vector<8x32xf32> -> vector<8x32xf32>
    %c0_7 = arith.constant 0 : index
    %c0_8 = arith.constant 0 : index
    %10 = vector.load %arg3[%c0_7, %c0_8] : memref<8x1xf32, #tpu.memory_space<vmem>>, vector<8x1xf32>
    %11 = vector.broadcast %10 : vector<8x1xf32> to vector<8x32xf32>
    %12 = arith.addf %9, %11 : vector<8x32xf32>
    %cst_9 = arith.constant 0.000000e+00 : f32
    %13 = vector.broadcast %cst_9 : f32 to vector<8x32xf32>
    %14 = arith.maximumf %12, %13 : vector<8x32xf32>
    %c0_10 = arith.constant 0 : index
    %c0_11 = arith.constant 0 : index
    %15 = vector.load %arg5[%c0_10, %c0_11] : memref<32x48xf32, #tpu.memory_space<vmem>>, vector<32x48xf32>
    %cst_12 = arith.constant dense<0.000000e+00> : vector<8x48xf32>
    %16 = tpu.matmul %14, %15, %cst_12 {dimension_numbers = #tpu.dot_dimension_numbers<[1], [0], [0], [1], [0, 0, 1, 1], [], []>} : vector<8x32xf32>, vector<32x48xf32>, vector<8x48xf32> -> vector<8x48xf32>
    %17 = vector.extract_strided_slice %16 {offsets = [0, 0], sizes = [8, 16], strides = [1, 1]} : vector<8x48xf32> to vector<8x16xf32>
    %18 = vector.extract_strided_slice %16 {offsets = [0, 16], sizes = [8, 16], strides = [1, 1]} : vector<8x48xf32> to vector<8x16xf32>
    %19 = arith.maximumf %17, %18 : vector<8x16xf32>
    %20 = vector.extract_strided_slice %16 {offsets = [0, 32], sizes = [8, 16], strides = [1, 1]} : vector<8x48xf32> to vector<8x16xf32>
    %21 = arith.maximumf %19, %20 : vector<8x16xf32>
    %c0_13 = arith.constant 0 : index
    %c0_14 = arith.constant 0 : index
    %22 = vector.load %arg14[%c0_13, %c0_14] : memref<16x8xf32, #tpu.memory_space<vmem>>, vector<16x8xf32>
    %cst_15 = arith.constant dense<0.000000e+00> : vector<8x8xf32>
    %23 = tpu.matmul %21, %22, %cst_15 {dimension_numbers = #tpu.dot_dimension_numbers<[1], [0], [0], [1], [0, 0, 1, 1], [], []>} : vector<8x16xf32>, vector<16x8xf32>, vector<8x8xf32> -> vector<8x8xf32>
    %c0_16 = arith.constant 0 : index
    %c0_17 = arith.constant 0 : index
    %24 = vector.load %arg12[%c0_16, %c0_17] : memref<8x8xf32, #tpu.memory_space<vmem>>, vector<8x8xf32>
    %cst_18 = arith.constant dense<0.000000e+00> : vector<8x8xf32>
    %25 = tpu.matmul %24, %23, %cst_18 {dimension_numbers = #tpu.dot_dimension_numbers<[1], [0], [0], [1], [0, 0, 1, 1], [], []>} : vector<8x8xf32>, vector<8x8xf32>, vector<8x8xf32> -> vector<8x8xf32>
    %c0_19 = arith.constant 0 : index
    %c0_20 = arith.constant 0 : index
    %26 = vector.load %arg13[%c0_19, %c0_20] : memref<8x1xf32, #tpu.memory_space<vmem>>, vector<8x1xf32>
    %27 = vector.broadcast %26 : vector<8x1xf32> to vector<8x8xf32>
    %28 = arith.addf %25, %27 : vector<8x8xf32>
    %c0_21 = arith.constant 0 : index
    %c0_22 = arith.constant 0 : index
    %29 = vector.load %arg8[%c0_21, %c0_22] : memref<16x24xf32, #tpu.memory_space<vmem>>, vector<16x24xf32>
    %cst_23 = arith.constant dense<0.000000e+00> : vector<8x24xf32>
    %30 = tpu.matmul %21, %29, %cst_23 {dimension_numbers = #tpu.dot_dimension_numbers<[1], [0], [0], [1], [0, 0, 1, 1], [], []>} : vector<8x16xf32>, vector<16x24xf32>, vector<8x24xf32> -> vector<8x24xf32>
    %31 = vector.extract_strided_slice %30 {offsets = [0, 0], sizes = [8, 8], strides = [1, 1]} : vector<8x24xf32> to vector<8x8xf32>
    %32 = vector.extract_strided_slice %30 {offsets = [0, 8], sizes = [8, 8], strides = [1, 1]} : vector<8x24xf32> to vector<8x8xf32>
    %33 = vector.extract_strided_slice %30 {offsets = [0, 16], sizes = [8, 8], strides = [1, 1]} : vector<8x24xf32> to vector<8x8xf32>
    %34 = tpu.concatenate %31, %32, %33 in 0 : vector<8x8xf32>, vector<8x8xf32>, vector<8x8xf32> -> vector<24x8xf32>
    %c0_24 = arith.constant 0 : index
    %c0_25 = arith.constant 0 : index
    %35 = vector.load %arg6[%c0_24, %c0_25] : memref<8x24xf32, #tpu.memory_space<vmem>>, vector<8x24xf32>
    %cst_26 = arith.constant dense<0.000000e+00> : vector<8x8xf32>
    %36 = tpu.matmul %35, %34, %cst_26 {dimension_numbers = #tpu.dot_dimension_numbers<[1], [0], [0], [1], [0, 0, 1, 1], [], []>} : vector<8x24xf32>, vector<24x8xf32>, vector<8x8xf32> -> vector<8x8xf32>
    %c0_27 = arith.constant 0 : index
    %c0_28 = arith.constant 0 : index
    %37 = vector.load %arg7[%c0_27, %c0_28] : memref<8x1xf32, #tpu.memory_space<vmem>>, vector<8x1xf32>
    %38 = vector.broadcast %37 : vector<8x1xf32> to vector<8x8xf32>
    %39 = arith.addf %36, %38 : vector<8x8xf32>
    %cst_29 = arith.constant 0.000000e+00 : f32
    %40 = vector.broadcast %cst_29 : f32 to vector<8x8xf32>
    %41 = arith.maximumf %39, %40 : vector<8x8xf32>
    %c0_30 = arith.constant 0 : index
    %c0_31 = arith.constant 0 : index
    %42 = vector.load %arg11[%c0_30, %c0_31] : memref<8x24xf32, #tpu.memory_space<vmem>>, vector<8x24xf32>
    %cst_32 = arith.constant dense<0.000000e+00> : vector<8x24xf32>
    %43 = tpu.matmul %41, %42, %cst_32 {dimension_numbers = #tpu.dot_dimension_numbers<[1], [0], [0], [1], [0, 0, 1, 1], [], []>} : vector<8x8xf32>, vector<8x24xf32>, vector<8x24xf32> -> vector<8x24xf32>
    %44 = vector.extract_strided_slice %43 {offsets = [0, 0], sizes = [8, 8], strides = [1, 1]} : vector<8x24xf32> to vector<8x8xf32>
    %45 = vector.extract_strided_slice %43 {offsets = [0, 8], sizes = [8, 8], strides = [1, 1]} : vector<8x24xf32> to vector<8x8xf32>
    %46 = vector.extract_strided_slice %43 {offsets = [0, 16], sizes = [8, 8], strides = [1, 1]} : vector<8x24xf32> to vector<8x8xf32>
    %47 = tpu.concatenate %44, %45, %46 in 0 : vector<8x8xf32>, vector<8x8xf32>, vector<8x8xf32> -> vector<24x8xf32>
    %c0_33 = arith.constant 0 : index
    %c0_34 = arith.constant 0 : index
    %48 = vector.load %arg9[%c0_33, %c0_34] : memref<8x24xf32, #tpu.memory_space<vmem>>, vector<8x24xf32>
    %cst_35 = arith.constant dense<0.000000e+00> : vector<8x8xf32>
    %49 = tpu.matmul %48, %47, %cst_35 {dimension_numbers = #tpu.dot_dimension_numbers<[1], [0], [0], [1], [0, 0, 1, 1], [], []>} : vector<8x24xf32>, vector<24x8xf32>, vector<8x8xf32> -> vector<8x8xf32>
    %c0_36 = arith.constant 0 : index
    %c0_37 = arith.constant 0 : index
    %50 = vector.load %arg10[%c0_36, %c0_37] : memref<8x1xf32, #tpu.memory_space<vmem>>, vector<8x1xf32>
    %51 = vector.broadcast %50 : vector<8x1xf32> to vector<8x8xf32>
    %52 = arith.addf %49, %51 : vector<8x8xf32>
    %cst_38 = arith.constant 0.000000e+00 : f32
    %53 = vector.broadcast %cst_38 : f32 to vector<8x8xf32>
    %54 = arith.maximumf %52, %53 : vector<8x8xf32>
    %55 = arith.addf %54, %28 : vector<8x8xf32>
    %c0_39 = arith.constant 0 : index
    %c0_40 = arith.constant 0 : index
    %56 = vector.load %arg23[%c0_39, %c0_40] : memref<8x4xf32, #tpu.memory_space<vmem>>, vector<8x4xf32>
    %cst_41 = arith.constant dense<0.000000e+00> : vector<8x4xf32>
    %57 = tpu.matmul %55, %56, %cst_41 {dimension_numbers = #tpu.dot_dimension_numbers<[1], [0], [0], [1], [0, 0, 1, 1], [], []>} : vector<8x8xf32>, vector<8x4xf32>, vector<8x4xf32> -> vector<8x4xf32>
    %c0_42 = arith.constant 0 : index
    %c0_43 = arith.constant 0 : index
    %58 = vector.load %arg21[%c0_42, %c0_43] : memref<16x8xf32, #tpu.memory_space<vmem>>, vector<16x8xf32>
    %cst_44 = arith.constant dense<0.000000e+00> : vector<16x4xf32>
    %59 = tpu.matmul %58, %57, %cst_44 {dimension_numbers = #tpu.dot_dimension_numbers<[1], [0], [0], [1], [0, 0, 1, 1], [], []>} : vector<16x8xf32>, vector<8x4xf32>, vector<16x4xf32> -> vector<16x4xf32>
    %c0_45 = arith.constant 0 : index
    %c0_46 = arith.constant 0 : index
    %60 = vector.load %arg22[%c0_45, %c0_46] : memref<16x1xf32, #tpu.memory_space<vmem>>, vector<16x1xf32>
    %61 = vector.broadcast %60 : vector<16x1xf32> to vector<16x4xf32>
    %62 = arith.addf %59, %61 : vector<16x4xf32>
    %c0_47 = arith.constant 0 : index
    %c0_48 = arith.constant 0 : index
    %63 = vector.load %arg17[%c0_47, %c0_48] : memref<8x12xf32, #tpu.memory_space<vmem>>, vector<8x12xf32>
    %cst_49 = arith.constant dense<0.000000e+00> : vector<8x12xf32>
    %64 = tpu.matmul %55, %63, %cst_49 {dimension_numbers = #tpu.dot_dimension_numbers<[1], [0], [0], [1], [0, 0, 1, 1], [], []>} : vector<8x8xf32>, vector<8x12xf32>, vector<8x12xf32> -> vector<8x12xf32>
    %65 = vector.extract_strided_slice %64 {offsets = [0, 0], sizes = [8, 4], strides = [1, 1]} : vector<8x12xf32> to vector<8x4xf32>
    %66 = vector.extract_strided_slice %64 {offsets = [0, 4], sizes = [8, 4], strides = [1, 1]} : vector<8x12xf32> to vector<8x4xf32>
    %67 = vector.extract_strided_slice %64 {offsets = [0, 8], sizes = [8, 4], strides = [1, 1]} : vector<8x12xf32> to vector<8x4xf32>
    %68 = tpu.concatenate %65, %66, %67 in 0 : vector<8x4xf32>, vector<8x4xf32>, vector<8x4xf32> -> vector<24x4xf32>
    %c0_50 = arith.constant 0 : index
    %c0_51 = arith.constant 0 : index
    %69 = vector.load %arg15[%c0_50, %c0_51] : memref<16x24xf32, #tpu.memory_space<vmem>>, vector<16x24xf32>
    %cst_52 = arith.constant dense<0.000000e+00> : vector<16x4xf32>
    %70 = tpu.matmul %69, %68, %cst_52 {dimension_numbers = #tpu.dot_dimension_numbers<[1], [0], [0], [1], [0, 0, 1, 1], [], []>} : vector<16x24xf32>, vector<24x4xf32>, vector<16x4xf32> -> vector<16x4xf32>
    %c0_53 = arith.constant 0 : index
    %c0_54 = arith.constant 0 : index
    %71 = vector.load %arg16[%c0_53, %c0_54] : memref<16x1xf32, #tpu.memory_space<vmem>>, vector<16x1xf32>
    %72 = vector.broadcast %71 : vector<16x1xf32> to vector<16x4xf32>
    %73 = arith.addf %70, %72 : vector<16x4xf32>
    %cst_55 = arith.constant 0.000000e+00 : f32
    %74 = vector.broadcast %cst_55 : f32 to vector<16x4xf32>
    %75 = arith.maximumf %73, %74 : vector<16x4xf32>
    %c0_56 = arith.constant 0 : index
    %c0_57 = arith.constant 0 : index
    %76 = vector.load %arg20[%c0_56, %c0_57] : memref<4x12xf32, #tpu.memory_space<vmem>>, vector<4x12xf32>
    %cst_58 = arith.constant dense<0.000000e+00> : vector<16x12xf32>
    %77 = tpu.matmul %75, %76, %cst_58 {dimension_numbers = #tpu.dot_dimension_numbers<[1], [0], [0], [1], [0, 0, 1, 1], [], []>} : vector<16x4xf32>, vector<4x12xf32>, vector<16x12xf32> -> vector<16x12xf32>
    %78 = vector.extract_strided_slice %77 {offsets = [0, 0], sizes = [16, 4], strides = [1, 1]} : vector<16x12xf32> to vector<16x4xf32>
    %79 = vector.extract_strided_slice %77 {offsets = [0, 4], sizes = [16, 4], strides = [1, 1]} : vector<16x12xf32> to vector<16x4xf32>
    %80 = vector.extract_strided_slice %77 {offsets = [0, 8], sizes = [16, 4], strides = [1, 1]} : vector<16x12xf32> to vector<16x4xf32>
    %81 = tpu.concatenate %78, %79, %80 in 0 : vector<16x4xf32>, vector<16x4xf32>, vector<16x4xf32> -> vector<48x4xf32>
    %c0_59 = arith.constant 0 : index
    %c0_60 = arith.constant 0 : index
    %82 = vector.load %arg18[%c0_59, %c0_60] : memref<16x48xf32, #tpu.memory_space<vmem>>, vector<16x48xf32>
    %cst_61 = arith.constant dense<0.000000e+00> : vector<16x4xf32>
    %83 = tpu.matmul %82, %81, %cst_61 {dimension_numbers = #tpu.dot_dimension_numbers<[1], [0], [0], [1], [0, 0, 1, 1], [], []>} : vector<16x48xf32>, vector<48x4xf32>, vector<16x4xf32> -> vector<16x4xf32>
    %c0_62 = arith.constant 0 : index
    %c0_63 = arith.constant 0 : index
    %84 = vector.load %arg19[%c0_62, %c0_63] : memref<16x1xf32, #tpu.memory_space<vmem>>, vector<16x1xf32>
    %85 = vector.broadcast %84 : vector<16x1xf32> to vector<16x4xf32>
    %86 = arith.addf %83, %85 : vector<16x4xf32>
    %cst_64 = arith.constant 0.000000e+00 : f32
    %87 = vector.broadcast %cst_64 : f32 to vector<16x4xf32>
    %88 = arith.maximumf %86, %87 : vector<16x4xf32>
    %89 = arith.addf %88, %62 : vector<16x4xf32>
    %cst_65 = arith.constant dense<0xFF800000> : vector<16xf32>
    %90 = vector.multi_reduction <maximumf>, %89, %cst_65 [1] : vector<16x4xf32> to vector<16xf32>
    %91 = vector.shape_cast %90 : vector<16xf32> to vector<16x1xf32>
    %cst_66 = arith.constant dense<0.000000e+00> : vector<16xf32>
    %92 = vector.multi_reduction <add>, %89, %cst_66 [1] : vector<16x4xf32> to vector<16xf32>
    %93 = vector.shape_cast %92 : vector<16xf32> to vector<16x1xf32>
    %cst_67 = arith.constant 2.500000e-01 : f32
    %94 = vector.broadcast %cst_67 : f32 to vector<16x1xf32>
    %95 = arith.mulf %93, %94 : vector<16x1xf32>
    %96 = tpu.concatenate %91, %95 in 0 : vector<16x1xf32>, vector<16x1xf32> -> vector<32x1xf32>
    %c0_68 = arith.constant 0 : index
    %c0_69 = arith.constant 0 : index
    %97 = vector.load %arg24[%c0_68, %c0_69] : memref<32x1xf32, #tpu.memory_space<vmem>>, vector<32x1xf32>
    %98 = arith.mulf %96, %97 : vector<32x1xf32>
    %c0_70 = arith.constant 0 : index
    %c0_71 = arith.constant 0 : index
    %99 = vector.load %arg25[%c0_70, %c0_71] : memref<32x1xf32, #tpu.memory_space<vmem>>, vector<32x1xf32>
    %100 = arith.addf %98, %99 : vector<32x1xf32>
    %c0_72 = arith.constant 0 : index
    %c0_73 = arith.constant 0 : index
    %101 = vector.load %arg26[%c0_72, %c0_73] : memref<16x32xf32, #tpu.memory_space<vmem>>, vector<16x32xf32>
    %cst_74 = arith.constant dense<0.000000e+00> : vector<16x1xf32>
    %102 = tpu.matmul %101, %100, %cst_74 {dimension_numbers = #tpu.dot_dimension_numbers<[1], [0], [0], [1], [0, 0, 1, 1], [], []>} : vector<16x32xf32>, vector<32x1xf32>, vector<16x1xf32> -> vector<16x1xf32>
    %cst_75 = arith.constant 0.000000e+00 : f32
    %103 = vector.broadcast %cst_75 : f32 to vector<16x1xf32>
    %104 = arith.maximumf %102, %103 : vector<16x1xf32>
    %c0_76 = arith.constant 0 : index
    %c0_77 = arith.constant 0 : index
    %105 = vector.load %arg27[%c0_76, %c0_77] : memref<5x16xf32, #tpu.memory_space<vmem>>, vector<5x16xf32>
    %cst_78 = arith.constant dense<0.000000e+00> : vector<5x1xf32>
    %106 = tpu.matmul %105, %104, %cst_78 {dimension_numbers = #tpu.dot_dimension_numbers<[1], [0], [0], [1], [0, 0, 1, 1], [], []>} : vector<5x16xf32>, vector<16x1xf32>, vector<5x1xf32> -> vector<5x1xf32>
    %c0_79 = arith.constant 0 : index
    %c0_80 = arith.constant 0 : index
    %107 = vector.load %arg28[%c0_79, %c0_80] : memref<5x1xf32, #tpu.memory_space<vmem>>, vector<5x1xf32>
    %108 = arith.addf %106, %107 : vector<5x1xf32>
    %c0_81 = arith.constant 0 : index
    %c0_82 = arith.constant 0 : index
    %109 = vector.load %arg29[%c0_81, %c0_82] : memref<5x2xf32, #tpu.memory_space<vmem>>, vector<5x1xf32>
    tpu.vector_store %arg29[%c0_81, %c0_82], %108 {strides = array<i32>} : memref<5x2xf32, #tpu.memory_space<vmem>>, vector<5x1xf32>,
    %c1 = arith.constant 1 : index
    %c0_83 = arith.constant 0 : index
    %c0_84 = arith.constant 0 : index
    %110 = vector.load %arg1[%c1, %c0_83, %c0_84] : memref<2x8x64xf32, #tpu.memory_space<vmem>>, vector<1x8x64xf32>
    %111 = vector.shape_cast %110 : vector<1x8x64xf32> to vector<8x64xf32>
    %c0_85 = arith.constant 0 : index
    %c0_86 = arith.constant 0 : index
    %112 = vector.load %arg4[%c0_85, %c0_86] : memref<64x96xf32, #tpu.memory_space<vmem>>, vector<64x96xf32>
    %cst_87 = arith.constant dense<0.000000e+00> : vector<8x96xf32>
    %113 = tpu.matmul %111, %112, %cst_87 {dimension_numbers = #tpu.dot_dimension_numbers<[1], [0], [0], [1], [0, 0, 1, 1], [], []>} : vector<8x64xf32>, vector<64x96xf32>, vector<8x96xf32> -> vector<8x96xf32>
    %114 = vector.extract_strided_slice %113 {offsets = [0, 0], sizes = [8, 32], strides = [1, 1]} : vector<8x96xf32> to vector<8x32xf32>
    %115 = vector.extract_strided_slice %113 {offsets = [0, 32], sizes = [8, 32], strides = [1, 1]} : vector<8x96xf32> to vector<8x32xf32>
    %116 = vector.extract_strided_slice %113 {offsets = [0, 64], sizes = [8, 32], strides = [1, 1]} : vector<8x96xf32> to vector<8x32xf32>
    %117 = tpu.concatenate %114, %115, %116 in 0 : vector<8x32xf32>, vector<8x32xf32>, vector<8x32xf32> -> vector<24x32xf32>
    %c0_88 = arith.constant 0 : index
    %c0_89 = arith.constant 0 : index
    %118 = vector.load %arg2[%c0_88, %c0_89] : memref<8x24xf32, #tpu.memory_space<vmem>>, vector<8x24xf32>
    %cst_90 = arith.constant dense<0.000000e+00> : vector<8x32xf32>
    %119 = tpu.matmul %118, %117, %cst_90 {dimension_numbers = #tpu.dot_dimension_numbers<[1], [0], [0], [1], [0, 0, 1, 1], [], []>} : vector<8x24xf32>, vector<24x32xf32>, vector<8x32xf32> -> vector<8x32xf32>
    %c0_91 = arith.constant 0 : index
    %c0_92 = arith.constant 0 : index
    %120 = vector.load %arg3[%c0_91, %c0_92] : memref<8x1xf32, #tpu.memory_space<vmem>>, vector<8x1xf32>
    %121 = vector.broadcast %120 : vector<8x1xf32> to vector<8x32xf32>
    %122 = arith.addf %119, %121 : vector<8x32xf32>
    %cst_93 = arith.constant 0.000000e+00 : f32
    %123 = vector.broadcast %cst_93 : f32 to vector<8x32xf32>
    %124 = arith.maximumf %122, %123 : vector<8x32xf32>
    %c0_94 = arith.constant 0 : index
    %c0_95 = arith.constant 0 : index
    %125 = vector.load %arg5[%c0_94, %c0_95] : memref<32x48xf32, #tpu.memory_space<vmem>>, vector<32x48xf32>
    %cst_96 = arith.constant dense<0.000000e+00> : vector<8x48xf32>
    %126 = tpu.matmul %124, %125, %cst_96 {dimension_numbers = #tpu.dot_dimension_numbers<[1], [0], [0], [1], [0, 0, 1, 1], [], []>} : vector<8x32xf32>, vector<32x48xf32>, vector<8x48xf32> -> vector<8x48xf32>
    %127 = vector.extract_strided_slice %126 {offsets = [0, 0], sizes = [8, 16], strides = [1, 1]} : vector<8x48xf32> to vector<8x16xf32>
    %128 = vector.extract_strided_slice %126 {offsets = [0, 16], sizes = [8, 16], strides = [1, 1]} : vector<8x48xf32> to vector<8x16xf32>
    %129 = arith.maximumf %127, %128 : vector<8x16xf32>
    %130 = vector.extract_strided_slice %126 {offsets = [0, 32], sizes = [8, 16], strides = [1, 1]} : vector<8x48xf32> to vector<8x16xf32>
    %131 = arith.maximumf %129, %130 : vector<8x16xf32>
    %c0_97 = arith.constant 0 : index
    %c0_98 = arith.constant 0 : index
    %132 = vector.load %arg14[%c0_97, %c0_98] : memref<16x8xf32, #tpu.memory_space<vmem>>, vector<16x8xf32>
    %cst_99 = arith.constant dense<0.000000e+00> : vector<8x8xf32>
    %133 = tpu.matmul %131, %132, %cst_99 {dimension_numbers = #tpu.dot_dimension_numbers<[1], [0], [0], [1], [0, 0, 1, 1], [], []>} : vector<8x16xf32>, vector<16x8xf32>, vector<8x8xf32> -> vector<8x8xf32>
    %c0_100 = arith.constant 0 : index
    %c0_101 = arith.constant 0 : index
    %134 = vector.load %arg12[%c0_100, %c0_101] : memref<8x8xf32, #tpu.memory_space<vmem>>, vector<8x8xf32>
    %cst_102 = arith.constant dense<0.000000e+00> : vector<8x8xf32>
    %135 = tpu.matmul %134, %133, %cst_102 {dimension_numbers = #tpu.dot_dimension_numbers<[1], [0], [0], [1], [0, 0, 1, 1], [], []>} : vector<8x8xf32>, vector<8x8xf32>, vector<8x8xf32> -> vector<8x8xf32>
    %c0_103 = arith.constant 0 : index
    %c0_104 = arith.constant 0 : index
    %136 = vector.load %arg13[%c0_103, %c0_104] : memref<8x1xf32, #tpu.memory_space<vmem>>, vector<8x1xf32>
    %137 = vector.broadcast %136 : vector<8x1xf32> to vector<8x8xf32>
    %138 = arith.addf %135, %137 : vector<8x8xf32>
    %c0_105 = arith.constant 0 : index
    %c0_106 = arith.constant 0 : index
    %139 = vector.load %arg8[%c0_105, %c0_106] : memref<16x24xf32, #tpu.memory_space<vmem>>, vector<16x24xf32>
    %cst_107 = arith.constant dense<0.000000e+00> : vector<8x24xf32>
    %140 = tpu.matmul %131, %139, %cst_107 {dimension_numbers = #tpu.dot_dimension_numbers<[1], [0], [0], [1], [0, 0, 1, 1], [], []>} : vector<8x16xf32>, vector<16x24xf32>, vector<8x24xf32> -> vector<8x24xf32>
    %141 = vector.extract_strided_slice %140 {offsets = [0, 0], sizes = [8, 8], strides = [1, 1]} : vector<8x24xf32> to vector<8x8xf32>
    %142 = vector.extract_strided_slice %140 {offsets = [0, 8], sizes = [8, 8], strides = [1, 1]} : vector<8x24xf32> to vector<8x8xf32>
    %143 = vector.extract_strided_slice %140 {offsets = [0, 16], sizes = [8, 8], strides = [1, 1]} : vector<8x24xf32> to vector<8x8xf32>
    %144 = tpu.concatenate %141, %142, %143 in 0 : vector<8x8xf32>, vector<8x8xf32>, vector<8x8xf32> -> vector<24x8xf32>
    %c0_108 = arith.constant 0 : index
    %c0_109 = arith.constant 0 : index
    %145 = vector.load %arg6[%c0_108, %c0_109] : memref<8x24xf32, #tpu.memory_space<vmem>>, vector<8x24xf32>
    %cst_110 = arith.constant dense<0.000000e+00> : vector<8x8xf32>
    %146 = tpu.matmul %145, %144, %cst_110 {dimension_numbers = #tpu.dot_dimension_numbers<[1], [0], [0], [1], [0, 0, 1, 1], [], []>} : vector<8x24xf32>, vector<24x8xf32>, vector<8x8xf32> -> vector<8x8xf32>
    %c0_111 = arith.constant 0 : index
    %c0_112 = arith.constant 0 : index
    %147 = vector.load %arg7[%c0_111, %c0_112] : memref<8x1xf32, #tpu.memory_space<vmem>>, vector<8x1xf32>
    %148 = vector.broadcast %147 : vector<8x1xf32> to vector<8x8xf32>
    %149 = arith.addf %146, %148 : vector<8x8xf32>
    %cst_113 = arith.constant 0.000000e+00 : f32
    %150 = vector.broadcast %cst_113 : f32 to vector<8x8xf32>
    %151 = arith.maximumf %149, %150 : vector<8x8xf32>
    %c0_114 = arith.constant 0 : index
    %c0_115 = arith.constant 0 : index
    %152 = vector.load %arg11[%c0_114, %c0_115] : memref<8x24xf32, #tpu.memory_space<vmem>>, vector<8x24xf32>
    %cst_116 = arith.constant dense<0.000000e+00> : vector<8x24xf32>
    %153 = tpu.matmul %151, %152, %cst_116 {dimension_numbers = #tpu.dot_dimension_numbers<[1], [0], [0], [1], [0, 0, 1, 1], [], []>} : vector<8x8xf32>, vector<8x24xf32>, vector<8x24xf32> -> vector<8x24xf32>
    %154 = vector.extract_strided_slice %153 {offsets = [0, 0], sizes = [8, 8], strides = [1, 1]} : vector<8x24xf32> to vector<8x8xf32>
    %155 = vector.extract_strided_slice %153 {offsets = [0, 8], sizes = [8, 8], strides = [1, 1]} : vector<8x24xf32> to vector<8x8xf32>
    %156 = vector.extract_strided_slice %153 {offsets = [0, 16], sizes = [8, 8], strides = [1, 1]} : vector<8x24xf32> to vector<8x8xf32>
    %157 = tpu.concatenate %154, %155, %156 in 0 : vector<8x8xf32>, vector<8x8xf32>, vector<8x8xf32> -> vector<24x8xf32>
    %c0_117 = arith.constant 0 : index
    %c0_118 = arith.constant 0 : index
    %158 = vector.load %arg9[%c0_117, %c0_118] : memref<8x24xf32, #tpu.memory_space<vmem>>, vector<8x24xf32>
    %cst_119 = arith.constant dense<0.000000e+00> : vector<8x8xf32>
    %159 = tpu.matmul %158, %157, %cst_119 {dimension_numbers = #tpu.dot_dimension_numbers<[1], [0], [0], [1], [0, 0, 1, 1], [], []>} : vector<8x24xf32>, vector<24x8xf32>, vector<8x8xf32> -> vector<8x8xf32>
    %c0_120 = arith.constant 0 : index
    %c0_121 = arith.constant 0 : index
    %160 = vector.load %arg10[%c0_120, %c0_121] : memref<8x1xf32, #tpu.memory_space<vmem>>, vector<8x1xf32>
    %161 = vector.broadcast %160 : vector<8x1xf32> to vector<8x8xf32>
    %162 = arith.addf %159, %161 : vector<8x8xf32>
    %cst_122 = arith.constant 0.000000e+00 : f32
    %163 = vector.broadcast %cst_122 : f32 to vector<8x8xf32>
    %164 = arith.maximumf %162, %163 : vector<8x8xf32>
    %165 = arith.addf %164, %138 : vector<8x8xf32>
    %c0_123 = arith.constant 0 : index
    %c0_124 = arith.constant 0 : index
    %166 = vector.load %arg23[%c0_123, %c0_124] : memref<8x4xf32, #tpu.memory_space<vmem>>, vector<8x4xf32>
    %cst_125 = arith.constant dense<0.000000e+00> : vector<8x4xf32>
    %167 = tpu.matmul %165, %166, %cst_125 {dimension_numbers = #tpu.dot_dimension_numbers<[1], [0], [0], [1], [0, 0, 1, 1], [], []>} : vector<8x8xf32>, vector<8x4xf32>, vector<8x4xf32> -> vector<8x4xf32>
    %c0_126 = arith.constant 0 : index
    %c0_127 = arith.constant 0 : index
    %168 = vector.load %arg21[%c0_126, %c0_127] : memref<16x8xf32, #tpu.memory_space<vmem>>, vector<16x8xf32>
    %cst_128 = arith.constant dense<0.000000e+00> : vector<16x4xf32>
    %169 = tpu.matmul %168, %167, %cst_128 {dimension_numbers = #tpu.dot_dimension_numbers<[1], [0], [0], [1], [0, 0, 1, 1], [], []>} : vector<16x8xf32>, vector<8x4xf32>, vector<16x4xf32> -> vector<16x4xf32>
    %c0_129 = arith.constant 0 : index
    %c0_130 = arith.constant 0 : index
    %170 = vector.load %arg22[%c0_129, %c0_130] : memref<16x1xf32, #tpu.memory_space<vmem>>, vector<16x1xf32>
    %171 = vector.broadcast %170 : vector<16x1xf32> to vector<16x4xf32>
    %172 = arith.addf %169, %171 : vector<16x4xf32>
    %c0_131 = arith.constant 0 : index
    %c0_132 = arith.constant 0 : index
    %173 = vector.load %arg17[%c0_131, %c0_132] : memref<8x12xf32, #tpu.memory_space<vmem>>, vector<8x12xf32>
    %cst_133 = arith.constant dense<0.000000e+00> : vector<8x12xf32>
    %174 = tpu.matmul %165, %173, %cst_133 {dimension_numbers = #tpu.dot_dimension_numbers<[1], [0], [0], [1], [0, 0, 1, 1], [], []>} : vector<8x8xf32>, vector<8x12xf32>, vector<8x12xf32> -> vector<8x12xf32>
    %175 = vector.extract_strided_slice %174 {offsets = [0, 0], sizes = [8, 4], strides = [1, 1]} : vector<8x12xf32> to vector<8x4xf32>
    %176 = vector.extract_strided_slice %174 {offsets = [0, 4], sizes = [8, 4], strides = [1, 1]} : vector<8x12xf32> to vector<8x4xf32>
    %177 = vector.extract_strided_slice %174 {offsets = [0, 8], sizes = [8, 4], strides = [1, 1]} : vector<8x12xf32> to vector<8x4xf32>
    %178 = tpu.concatenate %175, %176, %177 in 0 : vector<8x4xf32>, vector<8x4xf32>, vector<8x4xf32> -> vector<24x4xf32>
    %c0_134 = arith.constant 0 : index
    %c0_135 = arith.constant 0 : index
    %179 = vector.load %arg15[%c0_134, %c0_135] : memref<16x24xf32, #tpu.memory_space<vmem>>, vector<16x24xf32>
    %cst_136 = arith.constant dense<0.000000e+00> : vector<16x4xf32>
    %180 = tpu.matmul %179, %178, %cst_136 {dimension_numbers = #tpu.dot_dimension_numbers<[1], [0], [0], [1], [0, 0, 1, 1], [], []>} : vector<16x24xf32>, vector<24x4xf32>, vector<16x4xf32> -> vector<16x4xf32>
    %c0_137 = arith.constant 0 : index
    %c0_138 = arith.constant 0 : index
    %181 = vector.load %arg16[%c0_137, %c0_138] : memref<16x1xf32, #tpu.memory_space<vmem>>, vector<16x1xf32>
    %182 = vector.broadcast %181 : vector<16x1xf32> to vector<16x4xf32>
    %183 = arith.addf %180, %182 : vector<16x4xf32>
    %cst_139 = arith.constant 0.000000e+00 : f32
    %184 = vector.broadcast %cst_139 : f32 to vector<16x4xf32>
    %185 = arith.maximumf %183, %184 : vector<16x4xf32>
    %c0_140 = arith.constant 0 : index
    %c0_141 = arith.constant 0 : index
    %186 = vector.load %arg20[%c0_140, %c0_141] : memref<4x12xf32, #tpu.memory_space<vmem>>, vector<4x12xf32>
    %cst_142 = arith.constant dense<0.000000e+00> : vector<16x12xf32>
    %187 = tpu.matmul %185, %186, %cst_142 {dimension_numbers = #tpu.dot_dimension_numbers<[1], [0], [0], [1], [0, 0, 1, 1], [], []>} : vector<16x4xf32>, vector<4x12xf32>, vector<16x12xf32> -> vector<16x12xf32>
    %188 = vector.extract_strided_slice %187 {offsets = [0, 0], sizes = [16, 4], strides = [1, 1]} : vector<16x12xf32> to vector<16x4xf32>
    %189 = vector.extract_strided_slice %187 {offsets = [0, 4], sizes = [16, 4], strides = [1, 1]} : vector<16x12xf32> to vector<16x4xf32>
    %190 = vector.extract_strided_slice %187 {offsets = [0, 8], sizes = [16, 4], strides = [1, 1]} : vector<16x12xf32> to vector<16x4xf32>
    %191 = tpu.concatenate %188, %189, %190 in 0 : vector<16x4xf32>, vector<16x4xf32>, vector<16x4xf32> -> vector<48x4xf32>
    %c0_143 = arith.constant 0 : index
    %c0_144 = arith.constant 0 : index
    %192 = vector.load %arg18[%c0_143, %c0_144] : memref<16x48xf32, #tpu.memory_space<vmem>>, vector<16x48xf32>
    %cst_145 = arith.constant dense<0.000000e+00> : vector<16x4xf32>
    %193 = tpu.matmul %192, %191, %cst_145 {dimension_numbers = #tpu.dot_dimension_numbers<[1], [0], [0], [1], [0, 0, 1, 1], [], []>} : vector<16x48xf32>, vector<48x4xf32>, vector<16x4xf32> -> vector<16x4xf32>
    %c0_146 = arith.constant 0 : index
    %c0_147 = arith.constant 0 : index
    %194 = vector.load %arg19[%c0_146, %c0_147] : memref<16x1xf32, #tpu.memory_space<vmem>>, vector<16x1xf32>
    %195 = vector.broadcast %194 : vector<16x1xf32> to vector<16x4xf32>
    %196 = arith.addf %193, %195 : vector<16x4xf32>
    %cst_148 = arith.constant 0.000000e+00 : f32
    %197 = vector.broadcast %cst_148 : f32 to vector<16x4xf32>
    %198 = arith.maximumf %196, %197 : vector<16x4xf32>
    %199 = arith.addf %198, %172 : vector<16x4xf32>
    %cst_149 = arith.constant dense<0xFF800000> : vector<16xf32>
    %200 = vector.multi_reduction <maximumf>, %199, %cst_149 [1] : vector<16x4xf32> to vector<16xf32>
    %201 = vector.shape_cast %200 : vector<16xf32> to vector<16x1xf32>
    %cst_150 = arith.constant dense<0.000000e+00> : vector<16xf32>
    %202 = vector.multi_reduction <add>, %199, %cst_150 [1] : vector<16x4xf32> to vector<16xf32>
    %203 = vector.shape_cast %202 : vector<16xf32> to vector<16x1xf32>
    %cst_151 = arith.constant 2.500000e-01 : f32
    %204 = vector.broadcast %cst_151 : f32 to vector<16x1xf32>
    %205 = arith.mulf %203, %204 : vector<16x1xf32>
    %206 = tpu.concatenate %201, %205 in 0 : vector<16x1xf32>, vector<16x1xf32> -> vector<32x1xf32>
    %c0_152 = arith.constant 0 : index
    %c0_153 = arith.constant 0 : index
    %207 = vector.load %arg24[%c0_152, %c0_153] : memref<32x1xf32, #tpu.memory_space<vmem>>, vector<32x1xf32>
    %208 = arith.mulf %206, %207 : vector<32x1xf32>
    %c0_154 = arith.constant 0 : index
    %c0_155 = arith.constant 0 : index
    %209 = vector.load %arg25[%c0_154, %c0_155] : memref<32x1xf32, #tpu.memory_space<vmem>>, vector<32x1xf32>
    %210 = arith.addf %208, %209 : vector<32x1xf32>
    %c0_156 = arith.constant 0 : index
    %c0_157 = arith.constant 0 : index
    %211 = vector.load %arg26[%c0_156, %c0_157] : memref<16x32xf32, #tpu.memory_space<vmem>>, vector<16x32xf32>
    %cst_158 = arith.constant dense<0.000000e+00> : vector<16x1xf32>
    %212 = tpu.matmul %211, %210, %cst_158 {dimension_numbers = #tpu.dot_dimension_numbers<[1], [0], [0], [1], [0, 0, 1, 1], [], []>} : vector<16x32xf32>, vector<32x1xf32>, vector<16x1xf32> -> vector<16x1xf32>
    %cst_159 = arith.constant 0.000000e+00 : f32
    %213 = vector.broadcast %cst_159 : f32 to vector<16x1xf32>
    %214 = arith.maximumf %212, %213 : vector<16x1xf32>
    %c0_160 = arith.constant 0 : index
    %c0_161 = arith.constant 0 : index
    %215 = vector.load %arg27[%c0_160, %c0_161] : memref<5x16xf32, #tpu.memory_space<vmem>>, vector<5x16xf32>
    %cst_162 = arith.constant dense<0.000000e+00> : vector<5x1xf32>
    %216 = tpu.matmul %215, %214, %cst_162 {dimension_numbers = #tpu.dot_dimension_numbers<[1], [0], [0], [1], [0, 0, 1, 1], [], []>} : vector<5x16xf32>, vector<16x1xf32>, vector<5x1xf32> -> vector<5x1xf32>
    %c0_163 = arith.constant 0 : index
    %c0_164 = arith.constant 0 : index
    %217 = vector.load %arg28[%c0_163, %c0_164] : memref<5x1xf32, #tpu.memory_space<vmem>>, vector<5x1xf32>
    %218 = arith.addf %216, %217 : vector<5x1xf32>
    %c0_165 = arith.constant 0 : index
    %c1_166 = arith.constant 1 : index
    %219 = vector.load %arg29[%c0_165, %c1_166] : memref<5x2xf32, #tpu.memory_space<vmem>>, vector<5x1xf32>
    tpu.vector_store %arg29[%c0_165, %c1_166], %218 {strides = array<i32>} : memref<5x2xf32, #tpu.memory_space<vmem>>, vector<5x1xf32>,
    return
  }
  func.func @transform_0(%arg0: i32) -> (i32, i32, i32) {
    %c0_i32 = arith.constant 0 : i32
    %c0_i32_0 = arith.constant 0 : i32
    %c0_i32_1 = arith.constant 0 : i32
    %c0_i32_2 = arith.constant 0 : i32
    return %c0_i32, %c0_i32_0, %c0_i32_1 : i32, i32, i32
  }
  func.func @transform_1(%arg0: i32) -> (i32, i32) {
    %c0_i32 = arith.constant 0 : i32
    %c0_i32_0 = arith.constant 0 : i32
    %c0_i32_1 = arith.constant 0 : i32
    return %c0_i32, %c0_i32_0 : i32, i32
  }
  func.func @transform_2(%arg0: i32) -> (i32, i32) {
    %c0_i32 = arith.constant 0 : i32
    %c0_i32_0 = arith.constant 0 : i32
    %c0_i32_1 = arith.constant 0 : i32
    return %c0_i32, %c0_i32_0 : i32, i32
  }
  func.func @transform_3(%arg0: i32) -> (i32, i32) {
    %c0_i32 = arith.constant 0 : i32
    %c0_i32_0 = arith.constant 0 : i32
    %c0_i32_1 = arith.constant 0 : i32
    return %c0_i32, %c0_i32_0 : i32, i32
  }
  func.func @transform_4(%arg0: i32) -> (i32, i32) {
    %c0_i32 = arith.constant 0 : i32
    %c0_i32_0 = arith.constant 0 : i32
    %c0_i32_1 = arith.constant 0 : i32
    return %c0_i32, %c0_i32_0 : i32, i32
  }
  func.func @transform_5(%arg0: i32) -> (i32, i32) {
    %c0_i32 = arith.constant 0 : i32
    %c0_i32_0 = arith.constant 0 : i32
    %c0_i32_1 = arith.constant 0 : i32
    return %c0_i32, %c0_i32_0 : i32, i32
  }
  func.func @transform_6(%arg0: i32) -> (i32, i32) {
    %c0_i32 = arith.constant 0 : i32
    %c0_i32_0 = arith.constant 0 : i32
    %c0_i32_1 = arith.constant 0 : i32
    return %c0_i32, %c0_i32_0 : i32, i32
  }
  func.func @transform_7(%arg0: i32) -> (i32, i32) {
    %c0_i32 = arith.constant 0 : i32
    %c0_i32_0 = arith.constant 0 : i32
    %c0_i32_1 = arith.constant 0 : i32
    return %c0_i32, %c0_i32_0 : i32, i32
  }
  func.func @transform_8(%arg0: i32) -> (i32, i32) {
    %c0_i32 = arith.constant 0 : i32
    %c0_i32_0 = arith.constant 0 : i32
    %c0_i32_1 = arith.constant 0 : i32
    return %c0_i32, %c0_i32_0 : i32, i32
  }
  func.func @transform_9(%arg0: i32) -> (i32, i32) {
    %c0_i32 = arith.constant 0 : i32
    %c0_i32_0 = arith.constant 0 : i32
    %c0_i32_1 = arith.constant 0 : i32
    return %c0_i32, %c0_i32_0 : i32, i32
  }
  func.func @transform_10(%arg0: i32) -> (i32, i32) {
    %c0_i32 = arith.constant 0 : i32
    %c0_i32_0 = arith.constant 0 : i32
    %c0_i32_1 = arith.constant 0 : i32
    return %c0_i32, %c0_i32_0 : i32, i32
  }
  func.func @transform_11(%arg0: i32) -> (i32, i32) {
    %c0_i32 = arith.constant 0 : i32
    %c0_i32_0 = arith.constant 0 : i32
    %c0_i32_1 = arith.constant 0 : i32
    return %c0_i32, %c0_i32_0 : i32, i32
  }
  func.func @transform_12(%arg0: i32) -> (i32, i32) {
    %c0_i32 = arith.constant 0 : i32
    %c0_i32_0 = arith.constant 0 : i32
    %c0_i32_1 = arith.constant 0 : i32
    return %c0_i32, %c0_i32_0 : i32, i32
  }
  func.func @transform_13(%arg0: i32) -> (i32, i32) {
    %c0_i32 = arith.constant 0 : i32
    %c0_i32_0 = arith.constant 0 : i32
    %c0_i32_1 = arith.constant 0 : i32
    return %c0_i32, %c0_i32_0 : i32, i32
  }
  func.func @transform_14(%arg0: i32) -> (i32, i32) {
    %c0_i32 = arith.constant 0 : i32
    %c0_i32_0 = arith.constant 0 : i32
    %c0_i32_1 = arith.constant 0 : i32
    return %c0_i32, %c0_i32_0 : i32, i32
  }
  func.func @transform_15(%arg0: i32) -> (i32, i32) {
    %c0_i32 = arith.constant 0 : i32
    %c0_i32_0 = arith.constant 0 : i32
    %c0_i32_1 = arith.constant 0 : i32
    return %c0_i32, %c0_i32_0 : i32, i32
  }
  func.func @transform_16(%arg0: i32) -> (i32, i32) {
    %c0_i32 = arith.constant 0 : i32
    %c0_i32_0 = arith.constant 0 : i32
    %c0_i32_1 = arith.constant 0 : i32
    return %c0_i32, %c0_i32_0 : i32, i32
  }
  func.func @transform_17(%arg0: i32) -> (i32, i32) {
    %c0_i32 = arith.constant 0 : i32
    %c0_i32_0 = arith.constant 0 : i32
    %c0_i32_1 = arith.constant 0 : i32
    return %c0_i32, %c0_i32_0 : i32, i32
  }
  func.func @transform_18(%arg0: i32) -> (i32, i32) {
    %c0_i32 = arith.constant 0 : i32
    %c0_i32_0 = arith.constant 0 : i32
    %c0_i32_1 = arith.constant 0 : i32
    return %c0_i32, %c0_i32_0 : i32, i32
  }
  func.func @transform_19(%arg0: i32) -> (i32, i32) {
    %c0_i32 = arith.constant 0 : i32
    %c0_i32_0 = arith.constant 0 : i32
    %c0_i32_1 = arith.constant 0 : i32
    return %c0_i32, %c0_i32_0 : i32, i32
  }
  func.func @transform_20(%arg0: i32) -> (i32, i32) {
    %c0_i32 = arith.constant 0 : i32
    %c0_i32_0 = arith.constant 0 : i32
    %c0_i32_1 = arith.constant 0 : i32
    return %c0_i32, %c0_i32_0 : i32, i32
  }
  func.func @transform_21(%arg0: i32) -> (i32, i32) {
    %c0_i32 = arith.constant 0 : i32
    %c0_i32_0 = arith.constant 0 : i32
    %c0_i32_1 = arith.constant 0 : i32
    return %c0_i32, %c0_i32_0 : i32, i32
  }
  func.func @transform_22(%arg0: i32) -> (i32, i32) {
    %c0_i32 = arith.constant 0 : i32
    %c0_i32_0 = arith.constant 0 : i32
    %c0_i32_1 = arith.constant 0 : i32
    return %c0_i32, %c0_i32_0 : i32, i32
  }
  func.func @transform_23(%arg0: i32) -> (i32, i32) {
    %c0_i32 = arith.constant 0 : i32
    %c0_i32_0 = arith.constant 0 : i32
    %c0_i32_1 = arith.constant 0 : i32
    return %c0_i32, %c0_i32_0 : i32, i32
  }
  func.func @transform_24(%arg0: i32) -> (i32, i32) {
    %c0_i32 = arith.constant 0 : i32
    %c0_i32_0 = arith.constant 0 : i32
    %c0_i32_1 = arith.constant 0 : i32
    return %c0_i32, %c0_i32_0 : i32, i32
  }
  func.func @transform_25(%arg0: i32) -> (i32, i32) {
    %c0_i32 = arith.constant 0 : i32
    %c0_i32_0 = arith.constant 0 : i32
    %c0_i32_1 = arith.constant 0 : i32
    return %c0_i32, %c0_i32_0 : i32, i32
  }
  func.func @transform_26(%arg0: i32) -> (i32, i32) {
    %c0_i32 = arith.constant 0 : i32
    %c0_i32_0 = arith.constant 0 : i32
    %c0_i32_1 = arith.constant 0 : i32
    return %c0_i32, %c0_i32_0 : i32, i32
  }
  func.func @transform_27(%arg0: i32) -> (i32, i32) {
    %c0_i32 = arith.constant 0 : i32
    %c0_i32_0 = arith.constant 0 : i32
    %c0_i32_1 = arith.constant 0 : i32
    return %c0_i32, %c0_i32_0 : i32, i32
  }
  func.func @transform_28(%arg0: i32) -> (i32, i32) {
    %c0_i32 = arith.constant 0 : i32
    %c0_i32_0 = arith.constant 0 : i32
    %c0_i32_1 = arith.constant 0 : i32
    return %c0_i32, %c0_i32_0 : i32, i32
  }
}

</mosaic_0001>

<bundles_post_ra>
// kernel: resnet1d_forward.1
= control target key start
LH: loop header
LB: loop body
LE: loop exit
PB: predicated region body
PF: predicated region fallthrough
CT: control target
= control target key end

     0   :  { %v3522_v0 = vmov 0.0   ;;  %vm3523_vm0 = vmmov 0   ;;  %vm98_vm1 = vcmask 523264   ;;  %v3524_v10 = vmov 0   ;;  %s3526_s29 = smov 96   ;;  %s4249_s3 = inlined_call_operand.vmem [shape: f32[64,96], index: 3, kind: input, shape index: {}]   ;;  %s4250_s0 = inlined_call_operand.vmem [shape: f32[2,8,64], index: 0, kind: input, shape index: {}]   ;;  %s4251_s2 = inlined_call_operand.vmem [shape: f32[8,1], index: 2, kind: input, shape index: {}]   ;;  %s4252_s1 = inlined_call_operand.vmem [shape: f32[8,24], index: 1, kind: input, shape index: {}]   ;;  %s4253_s4 = inlined_call_operand.vmem [shape: f32[32,48], index: 4, kind: input, shape index: {}]   ;;  %s4254_s13 = inlined_call_operand.vmem [shape: f32[16,8], index: 13, kind: input, shape index: {}]   ;;  %s4255_s7 = inlined_call_operand.vmem [shape: f32[16,24], index: 7, kind: input, shape index: {}]   ;;  %s4256_s11 = inlined_call_operand.vmem [shape: f32[8,8], index: 11, kind: input, shape index: {}]   ;;  %s4257_s6 = inlined_call_operand.vmem [shape: f32[8,1], index: 6, kind: input, shape index: {}]   ;;  %s4258_s5 = inlined_call_operand.vmem [shape: f32[8,24], index: 5, kind: input, shape index: {}]   ;;  %s4259_s10 = inlined_call_operand.vmem [shape: f32[8,24], index: 10, kind: input, shape index: {}]   ;;  %s4260_s12 = inlined_call_operand.vmem [shape: f32[8,1], index: 12, kind: input, shape index: {}]   ;;  %s4261_s9 = inlined_call_operand.vmem [shape: f32[8,1], index: 9, kind: input, shape index: {}]   ;;  %s4262_s8 = inlined_call_operand.vmem [shape: f32[8,24], index: 8, kind: input, shape index: {}]   ;;  %s4263_s16 = inlined_call_operand.vmem [shape: f32[8,12], index: 16, kind: input, shape index: {}]   ;;  %s4264_s22 = inlined_call_operand.vmem [shape: f32[8,4], index: 22, kind: input, shape index: {}]   ;;  %s4265_s20 = inlined_call_operand.vmem [shape: f32[16,8], index: 20, kind: input, shape index: {}]   ;;  %s4266_s14 = inlined_call_operand.vmem [shape: f32[16,24], index: 14, kind: input, shape index: {}]   ;;  %s4267_s15 = inlined_call_operand.vmem [shape: f32[16,1], index: 15, kind: input, shape index: {}]   ;;  %s4268_s19 = inlined_call_operand.vmem [shape: f32[4,12], index: 19, kind: input, shape index: {}]   ;;  %s4269_s17 = inlined_call_operand.vmem [shape: f32[16,48], index: 17, kind: input, shape index: {}]   ;;  %s4270_s18 = inlined_call_operand.vmem [shape: f32[16,1], index: 18, kind: input, shape index: {}]   ;;  %s4271_s21 = inlined_call_operand.vmem [shape: f32[16,1], index: 21, kind: input, shape index: {}]   ;;  %s4272_s25 = inlined_call_operand.vmem [shape: f32[16,32], index: 25, kind: input, shape index: {}]   ;;  %s4273_s23 = inlined_call_operand.vmem [shape: f32[32,1], index: 23, kind: input, shape index: {}]   ;;  %s4274_s24 = inlined_call_operand.vmem [shape: f32[32,1], index: 24, kind: input, shape index: {}]   ;;  %s4275_s26 = inlined_call_operand.vmem [shape: f32[5,16], index: 26, kind: input, shape index: {}]   ;;  %s4276_s27 = inlined_call_operand.vmem [shape: f32[5,1], index: 27, kind: input, shape index: {}]   ;;  %s4277_s28 = inlined_call_operand.vmem [shape: f32[5,2], index: 28, kind: output, shape index: {}]  }
   0x1   :  { %4283 = sst [smem:[#allocation2_spill]] %s4249_s3  ;;  %3225 = vmatprep.subr.mxu0 %v3522_v0  ;;  %3241 = vmatprep.mubr.msk.f32.mxu0 %vm3523_vm0, %v3522_v0  ;;  %vm186_vm2 = vcmask 195584   ;;  %vm265_vm3 = vcmask 261120   ;;  %vm350_vm4 = vcmask 130048   ;;  %vm431_vm5 = vcmask 64512   ;;  %v3889_v59 = vld [vmem:[%s4262_s8] sm:$0xff] }
   0x2   :  { %4284 = sst [smem:[#allocation3_spill]] %s4250_s0  ;;  %3244 = vmatprep.subr.mxu1 %v3522_v0  ;;  %3250 = vmatprep.mubr.msk.f32.mxu1 %vm3523_vm0, %v3522_v0  ;;  %v3900_v60 = vld [vmem:[%s4263_s16] sm:$0xff]  ;;  %vm1180_vm6 = vcmask 1043456   ;;  %vm1173_vm7 = vcmask 31744   ;;  %vm1287_vm8 = vcmask 392192   ;;  %vm1563_vm9 = vcmask 4096  }
   0x3   :  { %4285 = sst [smem:[#allocation4_spill]] %s4251_s2  ;;  %3520 = vset.pattern.permute.xlu1 %v3524_v10  ;;  %3521 = vset.pattern.permute.xlu0 %v3524_v10  ;;  %v3905_v61 = vld [vmem:[%s4264_s22] sm:$0xff]  ;;  %vm3036_vm10 = vcmask 12296  }
   0x4   :  { %4286 = sst [smem:[#allocation5_spill]] %s4252_s1  ;;  %s3530_s1 = smov 1  }
   0x5   :  { %4287 = sst [smem:[#allocation6_spill]] %s4253_s4 }
   0x6   :  { %4288 = sst [smem:[#allocation7_spill]] %s4254_s13 }
   0x7   :  { %4289 = sst [smem:[#allocation8_spill]] %s4255_s7 }
   0x8   :  { %4290 = sst [smem:[#allocation9_spill]] %s4256_s11 }
   0x9   :  { %4291 = sst [smem:[#allocation10_spill]] %s4257_s6 }
   0xa   :  { %4292 = sst [smem:[#allocation11_spill]] %s4258_s5 }
   0xb   :  { %4293 = sst [smem:[#allocation12_spill]] %s4259_s10 }
   0xc   :  { %4294 = sst [smem:[#allocation13_spill]] %s4260_s12  ;;  %s3525_s12 = smov 64  }
   0xd   :  { %4295 = sst [smem:[#allocation14_spill]] %s4261_s9 }
   0xe   :  { %s4296_s13 = sld [smem:[#allocation2_spill]] }
   0xf   :  { %s4297_s7 = sld [smem:[#allocation3_spill]] }
  0x10   :  { %s4298_s0 = sld [smem:[#allocation4_spill]] }
  0x11   :  { %s4299_s9 = sld [smem:[#allocation5_spill]] }
  0x12   :  { %s4300_s5 = sld [smem:[#allocation6_spill]] }
  0x13   :  { %s4302_s3 = sld [smem:[#allocation8_spill]] }
  0x14   :  { %v3680_v1 = vld [vmem:[%s4296_s13 + $0x38] sm:$0xff]  ;;  %v3685_v2 = vld [vmem:[%s4296_s13 + $0x30] sm:$0xff]  ;;  %v3695_v3 = vld [vmem:[%s4296_s13 + $0x28] sm:$0xff]  ;;  %s4303_s11 = sld [smem:[#allocation9_spill]] }
  0x15   :  { %3226 = vmatpush3.msra.mxu0 %v3680_v1  ;;  %v3704_v4 = vld [vmem:[%s4296_s13 + $0x20] sm:$0xff]  ;;  %v3711_v5 = vld [vmem:[%s4296_s13 + $0x18] sm:$0xff]  ;;  %v3718_v6 = vld [vmem:[%s4296_s13 + $0x10] sm:$0xff]  ;;  %s4304_s6 = sld [smem:[#allocation10_spill]] }
  0x16   :  { %3227 = vmatprep.subr.mxu0 %v3522_v0  ;;  %v3725_v7 = vld [vmem:[%s4296_s13 + $0x8] sm:$0xff]  ;;  %v3732_v8 = vld [vmem:[%s4296_s13] sm:$0xff]  ;;  %s4305_s13 = sld [smem:[#allocation11_spill]] }
  0x17   :  { %3228 = vmatpush3.msra.mxu0 %v3685_v2  ;;  %v89_v9 = vld [vmem:[%s4297_s7] sm:$0xff]  ;;  %s4306_s2 = sld [smem:[#allocation12_spill]] }
  0x18   :  { %3229 = vmatprep.subr.mxu0 %v3522_v0  ;;  %v3747_v11 = vld [vmem:[%s4298_s0] sm:$0xff]  ;;  %v3762_v17 = vld [vmem:[%s4300_s5 + $0x18] sm:$0xff]  ;;  %v3774_v18 = vld [vmem:[%s4300_s5 + $0x10] sm:$0xff]  ;;  %s4307_s4 = sld [smem:[#allocation13_spill]] }
  0x19   :  { %3230 = vmatpush3.msra.mxu0 %v3695_v3  ;;  %183 = vperm.xlu1 %3520, %v3747_v11   ;;  %v3756_v16 = vld [vmem:[%s4299_s9] sm:$0xff]  ;;  %v3781_v19 = vld [vmem:[%s4300_s5 + $0x8] sm:$0xff]  ;;  %s4301_s9 = sld [smem:[#allocation7_spill]] }
  0x1a   :  { %3231 = vmatprep.subr.mxu0 %v3522_v0  ;;  %v3788_v20 = vld [vmem:[%s4300_s5] sm:$0xff]  ;;  %s3527_s5 = smov 112   ;;  %v3814_v34 = vld [vmem:[%s4302_s3 + $0x8] sm:$0xff] }
  0x1b   :  { %3232 = vmatpush3.msra.mxu0 %v3704_v4  ;;  %v3820_v35 = vld [vmem:[%s4302_s3] sm:$0xff]  ;;  %s4308_s3 = sld [smem:[#allocation14_spill]] }
  0x1c   :  { %3233 = vmatprep.subr.mxu0 %v3522_v0  ;;  %v3834_v36 = vld [vmem:[%s4303_s11] sm:$0xff] }
  0x1d   :  { %3234 = vmatpush3.msra.mxu0 %v3711_v5  ;;  %v3846_v41 = vld [vmem:[%s4304_s6] sm:$0xff]  ;;  %s3529_s6 = smov 124  }
  0x1e   :  { %3235 = vmatprep.subr.mxu0 %v3522_v0  ;;  %v3853_v44 = vld [vmem:[%s4305_s13] sm:$0xff] }
  0x1f   :  { %3236 = vmatpush3.msra.mxu0 %v3718_v6  ;;  %v3798_v26 = vld [vmem:[%s4301_s9 + $0x8] sm:$0xff]  ;;  %v3805_v27 = vld [vmem:[%s4301_s9] sm:$0xff]  ;;  %s3528_s9 = smov 120  }
  0x20   :  { %3237 = vmatprep.subr.mxu0 %v3522_v0  ;;  %v3864_v45 = vld [vmem:[%s4306_s2] sm:$0xff] }
  0x21   :  { %3238 = vmatpush3.msra.mxu0 %v3725_v7  ;;  %v3876_v55 = vld [vmem:[%s4307_s4] sm:$0xff] }
  0x22   :  { %3239 = vmatprep.subr.mxu0 %v3522_v0  ;;  %v3881_v56 = vld [vmem:[%s4308_s3] sm:$0xff] }
  0x23   :  { %3240 = vmatpush3.msra.mxu0 %v3732_v8 }
  0x24   :  { %3242 = vmatmul.mubr.msk.f32.vlgmr.msra.gmra.mxu0 %vm98_vm1, %v89_v9  ;;  %3271 = vmatprep.subr.mxu0 %v3522_v0 }
  0x25   :  { %3273 = vmatprep.mubr.msk.f32.mxu0 %vm3523_vm0, %v3522_v0 }
  0x94   :  { %v184_v21 = vpop.permute.xlu1 %183 }
  0xe4   :  { %v168_v12 = vpop.f32.mrf.mxu0 }
  0xe5   :  { %176 = vrot.lane.b32.xlu0 %v168_v12, %s3525_s12 }
  0xe6   :  { %v3243_v13 = vpop.f32.mrf.mxu0 }
  0xe9   :  { %173 = vrot.lane.b32.xlu0 %v168_v12, %s3526_s29 }
 0x157   :  { %v177_v14 = vpop.permute.xlu0 %176 }
 0x158   :  { %3245 = vmatpush3.msra.mxu1 %v177_v14 }
 0x159   :  { %3246 = vmatprep.subr.mxu1 %v3522_v0 }
 0x15b   :  { %v174_v15 = vpop.permute.xlu0 %173 }
 0x15c   :  { %3247 = vmatpush3.msra.mxu1 %v174_v15 }
 0x15d   :  { %3248 = vmatprep.subr.mxu1 %v3522_v0 }
 0x15e   :  { %3249 = vmatpush3.msra.mxu1 %v168_v12 }
 0x15f   :  { %3251 = vmatmul.mubr.msk.f32.vlgmr.msra.gmra.mxu1 %vm186_vm2, %v3756_v16  ;;  %3253 = vmatprep.subr.mxu1 %v3522_v0 }
 0x160   :  { %3254 = vmatpush3.msra.mxu1 %v3762_v17  ;;  %3261 = vmatprep.mubr.msk.f32.mxu1 %vm3523_vm0, %v3522_v0 }
 0x161   :  { %3255 = vmatprep.subr.mxu1 %v3522_v0 }
 0x162   :  { %3256 = vmatpush3.msra.mxu1 %v3774_v18 }
 0x163   :  { %3257 = vmatprep.subr.mxu1 %v3522_v0 }
 0x164   :  { %3258 = vmatpush3.msra.mxu1 %v3781_v19 }
 0x165   :  { %3259 = vmatprep.subr.mxu1 %v3522_v0 }
 0x166   :  { %3260 = vmatpush3.msra.mxu1 %v3788_v20 }
 0x167   :  { %3264 = vmatprep.subr.mxu1 %v3522_v0 }
 0x21f   :  { %v256_v22 = vpop.f32.mrf.mxu1 }
 0x220   :  { %v257_v23 = vadd.f32 %v256_v22, %v184_v21  ;;  %v3914_v21 = vld [vmem:[%s4265_s20] sm:$0xff] }
 0x221   :  { %v3252_v24 = vpop.f32.mrf.mxu1 }
 0x222   :  { %v260_v25 = vmax.f32 %v257_v23, 0.0  ;;  %v3921_v24 = vld [vmem:[%s4265_s20 + $0x8] sm:$0xff] }
 0x224   :  { %3262 = vmatmul.mubr.msk.f32.vlgmr.msra.gmra.mxu1 %vm265_vm3, %v260_v25  ;;  %v3927_v25 = vld [vmem:[%s4266_s14] sm:$0xff] }
 0x225   :  { %3268 = vmatprep.mubr.msk.f32.mxu1 %vm3523_vm0, %v3522_v0  ;;  %3265 = vmatpush3.msra.mxu1 %v3798_v26 }
 0x226   :  { %3266 = vmatprep.subr.mxu1 %v3522_v0 }
 0x227   :  { %3267 = vmatpush3.msra.mxu1 %v3805_v27 }
 0x228   :  { %3276 = vmatprep.subr.mxu1 %v3522_v0 }
 0x2e4   :  { %v335_v28 = vpop.f32.mrf.mxu1 }
 0x2e5   :  { %344 = vrot.lane.b32.xlu0 %v335_v28, %s3526_s29  ;;  %340 = vrot.lane.b32.xlu1 %v335_v28, %s3527_s5 }
 0x2e6   :  { %v3263_v29 = vpop.f32.mrf.mxu1 }
 0x357   :  { %v341_v30 = vpop.permute.xlu1 %340  ;;  %v345_v32 = vpop.permute.xlu0 %344 }
 0x358   :  { %v343_v31 = vmax.f32 %v335_v28, %v341_v30  ;;  %v3933_v30 = vld [vmem:[%s4267_s15 + $0x8] sm:$0xff] }
 0x35a   :  { %v347_v33 = vmax.f32 %v343_v31, %v345_v32  ;;  %v3938_v31 = vld [vmem:[%s4267_s15] sm:$0xff] }
 0x35c   :  { %3269 = vmatmul.mubr.msk.f32.vlgmr.msra.gmra.mxu1 %vm350_vm4, %v347_v33 }
 0x35d   :  { %3277 = vmatpush3.msra.mxu1 %v3814_v34  ;;  %3280 = vmatprep.mubr.msk.f32.mxu1 %vm3523_vm0, %v3522_v0 }
 0x35e   :  { %3278 = vmatprep.subr.mxu1 %v3522_v0 }
 0x35f   :  { %3279 = vmatpush3.msra.mxu1 %v3820_v35 }
 0x360   :  { %3281 = vmatmul.mubr.msk.f32.vlgmr.msra.gmra.mxu1 %vm350_vm4, %v347_v33  ;;  %3292 = vmatprep.subr.mxu1 %v3522_v0 }
 0x361   :  { %3294 = vmatprep.mubr.msk.f32.mxu1 %vm3523_vm0, %v3522_v0  ;;  %3293 = vmatpush3.msra.mxu1 %v3864_v45 }
 0x362   :  { %3306 = vmatprep.subr.mxu1 %v3522_v0 }
 0x41c   :  { %v420_v37 = vpop.f32.mrf.mxu1 }
 0x41d   :  { %3272 = vmatpush3.msra.mxu0 %v420_v37  ;;  %v3949_v37 = vld [vmem:[%s4266_s14 + $0x8] sm:$0xff] }
 0x41e   :  { %v3270_v38 = vpop.f32.mrf.mxu1  ;;  %3274 = vmatmul.mubr.msk.f32.vlgmr.msra.gmra.mxu0 %vm431_vm5, %v3834_v36  ;;  %3283 = vmatprep.subr.mxu0 %v3522_v0 }
 0x41f   :  { %3289 = vmatprep.mubr.msk.f32.mxu0 %vm3523_vm0, %v3522_v0  ;;  %v1172_v38 = vld [vmem:[%s4268_s19] sm:$0xf] }
 0x420   :  { %v573_v39 = vpop.f32.mrf.mxu1 }
 0x421   :  { %578 = vrot.lane.b32.xlu0 %v573_v39, %s3528_s9  ;;  %581 = vrot.lane.b32.xlu1 %v573_v39, %s3527_s5 }
 0x422   :  { %v3282_v40 = vpop.f32.mrf.mxu1 }
 0x425   :  { %588 = vperm.xlu1 %3520, %v3846_v41  }
 0x493   :  { %v582_v42 = vpop.permute.xlu1 %581  ;;  %v579_v43 = vpop.permute.xlu0 %578 }
 0x494   :  { %3284 = vmatpush3.msra.mxu0 %v582_v42 }
 0x495   :  { %3285 = vmatprep.subr.mxu0 %v3522_v0 }
 0x496   :  { %3286 = vmatpush3.msra.mxu0 %v579_v43 }
 0x497   :  { %3287 = vmatprep.subr.mxu0 %v3522_v0 }
 0x498   :  { %3288 = vmatpush3.msra.mxu0 %v573_v39 }
 0x499   :  { %3290 = vmatmul.mubr.msk.f32.vlgmr.msra.gmra.mxu0 %vm186_vm2, %v3853_v44  ;;  %3297 = vmatprep.subr.mxu0 %v3522_v0 }
 0x49a   :  { %3303 = vmatprep.mubr.msk.f32.mxu0 %vm3523_vm0, %v3522_v0 }
 0x4a0   :  { %v589_v48 = vpop.permute.xlu1 %588 }
 0x4de   :  { %v501_v46 = vpop.f32.mrf.mxu0 }
 0x4e0   :  { %v3275_v47 = vpop.f32.mrf.mxu0 }
 0x559   :  { %v660_v49 = vpop.f32.mrf.mxu0 }
 0x55a   :  { %v661_v50 = vadd.f32 %v660_v49, %v589_v48 }
 0x55b   :  { %v3291_v51 = vpop.f32.mrf.mxu0 }
 0x55c   :  { %v664_v52 = vmax.f32 %v661_v50, 0.0 }
 0x55e   :  { %3295 = vmatmul.mubr.msk.f32.vlgmr.msra.gmra.mxu1 %vm431_vm5, %v664_v52  ;;  %v3967_v52 = vld [vmem:[%s4269_s17] sm:$0xff] }
 0x55f   :  { %3308 = vmatprep.mubr.msk.f32.mxu1 %vm3523_vm0, %v3522_v0  ;;  %3307 = vmatpush3.msra.mxu1 %v3905_v61 }
 0x61e   :  { %v735_v53 = vpop.f32.mrf.mxu1 }
 0x61f   :  { %740 = vrot.lane.b32.xlu1 %v735_v53, %s3528_s9  ;;  %743 = vrot.lane.b32.xlu0 %v735_v53, %s3527_s5 }
 0x620   :  { %v3296_v54 = vpop.f32.mrf.mxu1 }
 0x623   :  { %428 = vperm.xlu1 %3520, %v3876_v55   ;;  %750 = vperm.xlu0 %3521, %v3881_v56  }
 0x691   :  { %v744_v57 = vpop.permute.xlu0 %743  ;;  %v741_v58 = vpop.permute.xlu1 %740 }
 0x692   :  { %3298 = vmatpush3.msra.mxu0 %v744_v57  ;;  %v3977_v57 = vld [vmem:[%s4270_s18 + $0x8] sm:$0xff] }
 0x693   :  { %3299 = vmatprep.subr.mxu0 %v3522_v0 }
 0x694   :  { %3300 = vmatpush3.msra.mxu0 %v741_v58  ;;  %v3983_v58 = vld [vmem:[%s4271_s21 + $0x8] sm:$0xff] }
 0x695   :  { %3301 = vmatprep.subr.mxu0 %v3522_v0 }
 0x696   :  { %3302 = vmatpush3.msra.mxu0 %v735_v53 }
 0x697   :  { %3304 = vmatmul.mubr.msk.f32.vlgmr.msra.gmra.mxu0 %vm186_vm2, %v3889_v59  ;;  %3316 = vmatprep.subr.mxu0 %v3522_v0 }
 0x698   :  { %3318 = vmatprep.mubr.msk.f32.mxu0 %vm3523_vm0, %v3522_v0  ;;  %3317 = vmatpush3.msra.mxu0 %v3900_v60 }
 0x699   :  { %3330 = vmatprep.subr.msk.mxu0 %vm1180_vm6, %v1172_v38 }
 0x69e   :  { %v751_v62 = vpop.permute.xlu0 %750  ;;  %v429_v63 = vpop.permute.xlu1 %428 }
 0x69f   :  { %v502_v13 = vadd.f32 %v501_v46, %v429_v63  ;;  %v3995_v63 = vld [vmem:[%s4271_s21] sm:$0xff] }
 0x757   :  { %v822_v9 = vpop.f32.mrf.mxu0 }
 0x758   :  { %v823_v10 = vadd.f32 %v822_v9, %v751_v62  ;;  %v3989_v62 = vld [vmem:[%s4270_s18] sm:$0xff] }
 0x759   :  { %v3305_v12 = vpop.f32.mrf.mxu0 }
 0x75a   :  { %v826_v14 = vmax.f32 %v823_v10, 0.0 }
 0x75c   :  { %v827_v15 = vadd.f32 %v826_v14, %v502_v13  ;;  %v4002_v14 = vld [vmem:[%s4269_s17 + $0x8] sm:$0xff] }
 0x75e   :  { %3309 = vmatmul.mubr.msk.f32.vlgmr.msra.gmra.mxu1 %vm431_vm5, %v827_v15  ;;  %3319 = vmatmul.mubr.msk.f32.vlgmr.msra.gmra.mxu0 %vm431_vm5, %v827_v15 }
 0x75f   :  { %3313 = vmatprep.mubr.msk.f32.mxu1 %vm431_vm5, %v3914_v21  ;;  %3331 = vmatpush3.msk.msra.mxu0 %vm1180_vm6, %v1172_v38 }
 0x81e   :  { %v898_v22 = vpop.f32.mrf.mxu1  ;;  %v1064_v23 = vpop.f32.mrf.mxu0 }
 0x81f   :  { %3311 = vmatprep.subr.mxu1 %v898_v22  ;;  %1069 = vrot.lane.b32.xlu0 %v1064_v23, %s3529_s6 }
 0x820   :  { %1072 = vrot.lane.b32.xlu1 %v1064_v23, %s3528_s9  ;;  %v3310_v28 = vpop.f32.mrf.mxu1  ;;  %3312 = vmatpush3.msra.mxu1 %v898_v22  ;;  %v3320_v29 = vpop.f32.mrf.mxu0 }
 0x821   :  { %3314 = vmatmul.mubr.msk.f32.vlgmr.msra.gmra.mxu1 %vm431_vm5, %v3921_v24 }
 0x822   :  { %3327 = vmatprep.mubr.msk.f32.mxu1 %vm186_vm2, %v3927_v25 }
 0x823   :  { %1086 = vperm.xlu0 %3521, %v3933_v30  }
 0x824   :  { %1081 = vperm.xlu1 %3520, %v3938_v31  }
 0x891   :  { %v1070_v33 = vpop.permute.xlu0 %1069 }
 0x892   :  { %v1073_v32 = vpop.permute.xlu1 %1072 }
 0x893   :  { %3321 = vmatprep.subr.mxu1 %v1073_v32 }
 0x894   :  { %3322 = vmatpush3.msra.mxu1 %v1073_v32 }
 0x895   :  { %3323 = vmatprep.subr.mxu1 %v1070_v33 }
 0x896   :  { %3324 = vmatpush3.msra.mxu1 %v1070_v33 }
 0x897   :  { %3325 = vmatprep.subr.mxu1 %v1064_v23 }
 0x898   :  { %3326 = vmatpush3.msra.mxu1 %v1064_v23 }
 0x899   :  { %3328 = vmatmul.mubr.msk.f32.vlgmr.msra.gmra.mxu1 %vm186_vm2, %v3949_v37 }
 0x89e   :  { %v1087_v43 = vpop.permute.xlu0 %1086 }
 0x89f   :  { %v1082_v46 = vpop.permute.xlu1 %1081 }
 0x8e1   :  { %v3958_v39 = vpop.f32.mrf.mxu1 }
 0x8e3   :  { %v3960_v40 = vpop.f32.mrf.mxu1 }
 0x959   :  { %v3329_v42 = vpop.f32.mrf.mxu1 }
 0x95a   :  { %v1167_v47 = vadd.f32 %v3329_v42, %v1087_v43 }
 0x95b   :  { %v1161_v48 = vpop.f32.mrf.mxu1 }
 0x95c   :  { %v1162_v49 = vadd.f32 %v1161_v48, %v1082_v46  ;;  %v1171_v51 = vmax.f32 %v1167_v47, 0.0  ;;  %v4050_v48 = vld [vmem:[%s4273_s23 + $0x18] sm:$0xff] }
 0x95e   :  { %v1170_v50 = vmax.f32 %v1162_v49, 0.0 }
 0x960   :  { %3332 = vmatprep.mubr.msk.f32.mxu0 %vm1173_vm7, %v1170_v50 }
 0x961   :  { %3333 = vmatmul.mubr.msk.f32.vlgmr.msra.gmra.mxu0 %vm1173_vm7, %v1171_v51  ;;  %v4055_v51 = vld [vmem:[%s4273_s23 + $0x10] sm:$0xff] }
 0x962   :  { %3347 = vmatprep.mubr.msk.f32.mxu0 %vm1287_vm8, %v3967_v52 }
 0xa21   :  { %v3334_v53 = vpop.f32.mrf.mxu0 }
 0xa22   :  { %1269 = vrot.lane.b32.xlu1 %v3334_v53, %s3528_s9 }
 0xa23   :  { %v1250_v54 = vpop.f32.mrf.mxu0 }
 0xa24   :  { %1267 = vrot.lane.b32.xlu0 %v1250_v54, %s3528_s9 }
 0xa26   :  { %1263 = vrot.lane.b32.xlu1 %v3334_v53, %s3529_s6 }
 0xa28   :  { %1261 = vrot.lane.b32.xlu0 %v1250_v54, %s3529_s6 }
 0xa2a   :  { %1284 = vperm.xlu1 %3520, %v3977_v57  }
 0xa2c   :  { %913 = vperm.xlu0 %3521, %v3983_v58  }
 0xa2e   :  { %1279 = vperm.xlu1 %3520, %v3989_v62  }
 0xa30   :  { %908 = vperm.xlu0 %3521, %v3995_v63  }
 0xa94   :  { %v1270_v9 = vpop.permute.xlu1 %1269 }
 0xa95   :  { %3335 = vmatprep.subr.mxu0 %v1270_v9 }
 0xa96   :  { %3336 = vmatpush3.msra.mxu0 %v1270_v9  ;;  %v1268_v10 = vpop.permute.xlu0 %1267 }
 0xa97   :  { %3337 = vmatprep.subr.mxu0 %v1268_v10 }
 0xa98   :  { %v1264_v12 = vpop.permute.xlu1 %1263  ;;  %3338 = vmatpush3.msra.mxu0 %v1268_v10  ;;  %v4066_v10 = vld [vmem:[%s4273_s23] sm:$0xff] }
 0xa99   :  { %3339 = vmatprep.subr.mxu0 %v1264_v12 }
 0xa9a   :  { %3340 = vmatpush3.msra.mxu0 %v1264_v12  ;;  %v1262_v13 = vpop.permute.xlu0 %1261 }
 0xa9b   :  { %3341 = vmatprep.subr.mxu0 %v1262_v13 }
 0xa9c   :  { %3342 = vmatpush3.msra.mxu0 %v1262_v13  ;;  %v4071_v13 = vld [vmem:[%s4273_s23 + $0x8] sm:$0xff] }
 0xa9d   :  { %3343 = vmatprep.subr.mxu0 %v3334_v53 }
 0xa9e   :  { %3344 = vmatpush3.msra.mxu0 %v3334_v53 }
 0xa9f   :  { %3345 = vmatprep.subr.mxu0 %v1250_v54 }
 0xaa0   :  { %3346 = vmatpush3.msra.mxu0 %v1250_v54  ;;  %v4060_v54 = vld [vmem:[%s4274_s24 + $0x18] sm:$0xff] }
 0xaa1   :  { %3348 = vmatmul.mubr.msk.f32.vlgmr.msra.gmra.mxu0 %vm1287_vm8, %v4002_v14  ;;  %3368 = vmatprep.subr.mxu0 %v3522_v0 }
 0xaa2   :  { %3369 = vmatpush3.msra.mxu0 %v3680_v1  ;;  %3384 = vmatprep.mubr.msk.f32.mxu0 %vm3523_vm0, %v3522_v0  ;;  %v3065_v1 = vld [vmem:[%s4297_s7 + $0x8] sm:$0xff] }
 0xaa3   :  { %3370 = vmatprep.subr.mxu0 %v3522_v0 }
 0xaa4   :  { %3371 = vmatpush3.msra.mxu0 %v3685_v2 }
 0xaa5   :  { %3372 = vmatprep.subr.mxu0 %v3522_v0  ;;  %v1285_v2 = vpop.permute.xlu1 %1284 }
 0xaa6   :  { %3373 = vmatpush3.msra.mxu0 %v3695_v3 }
 0xaa7   :  { %3374 = vmatprep.subr.mxu0 %v3522_v0  ;;  %v914_v3 = vpop.permute.xlu0 %913 }
 0xaa8   :  { %3375 = vmatpush3.msra.mxu0 %v3704_v4 }
 0xaa9   :  { %3376 = vmatprep.subr.mxu0 %v3522_v0 }
 0xaaa   :  { %3377 = vmatpush3.msra.mxu0 %v3711_v5  ;;  %v1280_v5 = vpop.permute.xlu1 %1279 }
 0xaab   :  { %3378 = vmatprep.subr.mxu0 %v3522_v0  ;;  %v909_v15 = vpop.permute.xlu0 %908 }
 0xaac   :  { %3379 = vmatpush3.msra.mxu0 %v3718_v6 }
 0xaad   :  { %3380 = vmatprep.subr.mxu0 %v3522_v0 }
 0xaae   :  { %3381 = vmatpush3.msra.mxu0 %v3725_v7  ;;  %v994_v7 = vadd.f32 %v3958_v39, %v914_v3 }
 0xaaf   :  { %3382 = vmatprep.subr.mxu0 %v3522_v0 }
 0xab0   :  { %3383 = vmatpush3.msra.mxu0 %v3732_v8  ;;  %v989_v8 = vadd.f32 %v3960_v40, %v909_v15  ;;  %v4041_v40 = vld [vmem:[%s4272_s25] sm:$0xff] }
 0xab1   :  { %3385 = vmatmul.mubr.msk.f32.vlgmr.msra.gmra.mxu0 %vm98_vm1, %v3065_v1  ;;  %3414 = vmatprep.subr.mxu0 %v3522_v0  ;;  %v4076_v1 = vld [vmem:[%s4274_s24 + $0x10] sm:$0xff] }
 0xab2   :  { %3416 = vmatprep.mubr.msk.f32.mxu0 %vm3523_vm0, %v3522_v0  ;;  %3358 = vmatprep.mubr.msk.f32.mxu1 %vm265_vm3, %v4041_v40 }
 0xb61   :  { %v3349_v4 = vpop.f32.mrf.mxu0 }
 0xb62   :  { %v1366_v6 = vadd.f32 %v3349_v4, %v1285_v2  ;;  %v4083_v4 = vld [vmem:[%s4274_s24 + $0x8] sm:$0xff] }
 0xb63   :  { %v1360_v22 = vpop.f32.mrf.mxu0 }
 0xb64   :  { %v1370_v23 = vmax.f32 %v1366_v6, 0.0  ;;  %v1361_v28 = vadd.f32 %v1360_v22, %v1280_v5 }
 0xb66   :  { %v1369_v29 = vmax.f32 %v1361_v28, 0.0  ;;  %v1372_v32 = vadd.f32 %v1370_v23, %v994_v7  ;;  %v4091_v7 = vld [vmem:[%s4274_s24] sm:$0xff] }
 0xb68   :  { %v1382_v33 = vsel %vm1173_vm7, %v1372_v32, 0.0  ;;  %v1371_v38 = vadd.f32 %v1369_v29, %v989_v8  ;;  %v1376_v46 = vsel %vm1173_vm7, %v1372_v32, -inf  ;;  %v4098_v8 = vld [vmem:[%s4272_s25 + $0x8] sm:$0xff] }
 0xb69   :  { %1383 = vadd.xlane.f32.xlu1 %v1382_v33 }
 0xb6a   :  { %v1379_v42 = vsel %vm1173_vm7, %v1371_v38, 0.0  ;;  %v1373_v43 = vsel %vm1173_vm7, %v1371_v38, -inf }
 0xb6b   :  { %1380 = vadd.xlane.f32.xlu0 %v1379_v42  ;;  %v1488_v42 = vld [vmem:[%s4275_s26] sm:$0x1f] }
 0xb6d   :  { %1374 = vmax.xlane.f32.xlu1 %v1373_v43 }
 0xb6f   :  { %1377 = vmax.xlane.f32.xlu0 %v1376_v46 }
 0xb71   :  { %v1644_v39 = vpop.f32.mrf.mxu0 }
 0xb73   :  { %v3386_v47 = vpop.f32.mrf.mxu0 }
 0xb7e   :  { %1649 = vrot.lane.b32.xlu1 %v1644_v39, %s3526_s29 }
 0xb82   :  { %1659 = vperm.xlu1 %3520, %v3747_v11  }
 0xb85   :  { %1652 = vrot.lane.b32.xlu0 %v1644_v39, %s3525_s12 }
 0xbf2   :  { %v1384_v49 = vpop.xlane.xlu1 %1383 }
 0xbf3   :  { %v1386_v50 = vmul.f32 0.25, %v1384_v49 }
 0xbf4   :  { %v1381_v53 = vpop.xlane.xlu0 %1380 }
 0xbf5   :  { %v1394_v11 = vmul.f32 %v4050_v48, %v1386_v50  ;;  %v1385_v9 = vmul.f32 0.25, %v1381_v53 }
 0xbf6   :  { %v1375_v12 = vpop.xlane.xlu1 %1374 }
 0xbf7   :  { %v1393_v2 = vmul.f32 %v4055_v51, %v1385_v9  ;;  %v1402_v3 = vadd.f32 %v4060_v54, %v1394_v11  ;;  %v1391_v6 = vmul.f32 %v4066_v10, %v1375_v12 }
 0xbf8   :  { %v1378_v5 = vpop.xlane.xlu0 %1377 }
 0xbf9   :  { %v1392_v15 = vmul.f32 %v4071_v13, %v1378_v5  ;;  %3350 = vmatprep.subr.mxu1 %v1402_v3  ;;  %v1401_v22 = vadd.f32 %v4076_v1, %v1393_v2  ;;  %v1399_v28 = vadd.f32 %v4091_v7, %v1391_v6 }
 0xbfa   :  { %3351 = vmatpush3.msra.mxu1 %v1402_v3  ;;  %v1650_v46 = vpop.permute.xlu1 %1649 }
 0xbfb   :  { %v1400_v23 = vadd.f32 %v4083_v4, %v1392_v15  ;;  %3352 = vmatprep.subr.mxu1 %v1401_v22 }
 0xbfc   :  { %3353 = vmatpush3.msra.mxu1 %v1401_v22  ;;  %v1653_v43 = vpop.permute.xlu0 %1652 }
 0xbfd   :  { %3354 = vmatprep.subr.mxu1 %v1400_v23 }
 0xbfe   :  { %3355 = vmatpush3.msra.mxu1 %v1400_v23 }
 0xbff   :  { %3356 = vmatprep.subr.mxu1 %v1399_v28 }
 0xc00   :  { %3357 = vmatpush3.msra.mxu1 %v1399_v28 }
 0xc01   :  { %3359 = vmatmul.mubr.msk.f32.vlgmr.msra.gmra.mxu1 %vm265_vm3, %v4098_v8  ;;  %3361 = vmatprep.subr.mxu1 %v3522_v0 }
 0xc02   :  { %3365 = vmatprep.mubr.msk.f32.mxu1 %vm3523_vm0, %v3522_v0 }
 0xcc1   :  { %v3360_v29 = vpop.f32.mrf.mxu1 }
 0xcc2   :  { %v1487_v32 = vmax.f32 %v3360_v29, 0.0 }
 0xcc3   :  { %v1477_v33 = vpop.f32.mrf.mxu1 }
 0xcc4   :  { %v1486_v38 = vmax.f32 %v1477_v33, 0.0  ;;  %3362 = vmatpush3.msra.mxu1 %v1487_v32 }
 0xcc5   :  { %3363 = vmatprep.subr.mxu1 %v3522_v0 }
 0xcc6   :  { %3364 = vmatpush3.msra.mxu1 %v1486_v38 }
 0xcc7   :  { %3366 = vmatmul.mubr.msk.f32.vlgmr.msra.gmra.mxu1 %vm350_vm4, %v1488_v42  ;;  %3387 = vmatprep.subr.mxu1 %v3522_v0 }
 0xcc8   :  { %3388 = vmatpush3.msra.mxu1 %v1653_v43  ;;  %3393 = vmatprep.mubr.msk.f32.mxu1 %vm3523_vm0, %v3522_v0 }
 0xcc9   :  { %3389 = vmatprep.subr.mxu1 %v3522_v0 }
 0xcca   :  { %3390 = vmatpush3.msra.mxu1 %v1650_v46 }
 0xccb   :  { %3391 = vmatprep.subr.mxu1 %v3522_v0 }
 0xccc   :  { %3392 = vmatpush3.msra.mxu1 %v1644_v39 }
 0xccd   :  { %3394 = vmatmul.mubr.msk.f32.vlgmr.msra.gmra.mxu1 %vm186_vm2, %v3756_v16  ;;  %3396 = vmatprep.subr.mxu1 %v3522_v0  ;;  %v1489_v16 = vld [vmem:[%s4276_s27] sm:$0x1f] }
 0xcce   :  { %3397 = vmatpush3.msra.mxu1 %v3762_v17  ;;  %3404 = vmatprep.mubr.msk.f32.mxu1 %vm3523_vm0, %v3522_v0 }
 0xccf   :  { %3398 = vmatprep.subr.mxu1 %v3522_v0 }
 0xcd0   :  { %3399 = vmatpush3.msra.mxu1 %v3774_v18  ;;  %v1660_v18 = vpop.permute.xlu1 %1659 }
 0xcd1   :  { %3400 = vmatprep.subr.mxu1 %v3522_v0 }
 0xcd2   :  { %3401 = vmatpush3.msra.mxu1 %v3781_v19 }
 0xcd3   :  { %3402 = vmatprep.subr.mxu1 %v3522_v0 }
 0xcd4   :  { %3403 = vmatpush3.msra.mxu1 %v3788_v20 }
 0xcd5   :  { %3407 = vmatprep.subr.mxu1 %v3522_v0 }
 0xd87   :  { %v1559_v17 = vpop.f32.mrf.mxu1 }
 0xd88   :  { %v1560_v39 = vadd.f32 %v1559_v17, %v1489_v16 }
 0xd89   :  { %v3367_v47 = vpop.f32.mrf.mxu1 }
 0xd8a   :  { %1564 = vst.msk [vmem:[%s4277_s28] sm:$0x1f] %vm1563_vm9, %v1560_v39 }
 0xd8d   :  { %v1731_v19 = vpop.f32.mrf.mxu1 }
 0xd8e   :  { %v1732_v49 = vadd.f32 %v1731_v19, %v1660_v18 }
 0xd8f   :  { %v3395_v50 = vpop.f32.mrf.mxu1 }
 0xd90   :  { %v1735_v53 = vmax.f32 %v1732_v49, 0.0 }
 0xd92   :  { %3405 = vmatmul.mubr.msk.f32.vlgmr.msra.gmra.mxu1 %vm265_vm3, %v1735_v53 }
 0xd93   :  { %3408 = vmatpush3.msra.mxu1 %v3798_v26  ;;  %3411 = vmatprep.mubr.msk.f32.mxu1 %vm3523_vm0, %v3522_v0 }
 0xd94   :  { %3409 = vmatprep.subr.mxu1 %v3522_v0 }
 0xd95   :  { %3410 = vmatpush3.msra.mxu1 %v3805_v27 }
 0xd96   :  { %3419 = vmatprep.subr.mxu1 %v3522_v0 }
 0xe52   :  { %v1809_v20 = vpop.f32.mrf.mxu1 }
 0xe53   :  { %1818 = vrot.lane.b32.xlu1 %v1809_v20, %s3526_s29  ;;  %1814 = vrot.lane.b32.xlu0 %v1809_v20, %s3527_s5 }
 0xe54   :  { %v3406_v11 = vpop.f32.mrf.mxu1 }
 0xec5   :  { %v1815_v9 = vpop.permute.xlu0 %1814  ;;  %v1819_v2 = vpop.permute.xlu1 %1818 }
 0xec6   :  { %v1817_v12 = vmax.f32 %v1809_v20, %v1815_v9 }
 0xec8   :  { %v1821_v3 = vmax.f32 %v1817_v12, %v1819_v2 }
 0xeca   :  { %3412 = vmatmul.mubr.msk.f32.vlgmr.msra.gmra.mxu1 %vm350_vm4, %v1821_v3 }
 0xecb   :  { %3420 = vmatpush3.msra.mxu1 %v3814_v34  ;;  %3423 = vmatprep.mubr.msk.f32.mxu1 %vm3523_vm0, %v3522_v0 }
 0xecc   :  { %3421 = vmatprep.subr.mxu1 %v3522_v0 }
 0xecd   :  { %3422 = vmatpush3.msra.mxu1 %v3820_v35 }
 0xece   :  { %3424 = vmatmul.mubr.msk.f32.vlgmr.msra.gmra.mxu1 %vm350_vm4, %v1821_v3  ;;  %3435 = vmatprep.subr.mxu1 %v3522_v0 }
 0xecf   :  { %3436 = vmatpush3.msra.mxu1 %v3864_v45  ;;  %3437 = vmatprep.mubr.msk.f32.mxu1 %vm3523_vm0, %v3522_v0 }
 0xed0   :  { %3449 = vmatprep.subr.mxu1 %v3522_v0 }
 0xf8a   :  { %v1893_v26 = vpop.f32.mrf.mxu1 }
 0xf8b   :  { %3415 = vmatpush3.msra.mxu0 %v1893_v26 }
 0xf8c   :  { %v3413_v27 = vpop.f32.mrf.mxu1  ;;  %3417 = vmatmul.mubr.msk.f32.vlgmr.msra.gmra.mxu0 %vm431_vm5, %v3834_v36  ;;  %3426 = vmatprep.subr.mxu0 %v3522_v0 }
 0xf8d   :  { %3432 = vmatprep.mubr.msk.f32.mxu0 %vm3523_vm0, %v3522_v0 }
 0xf8e   :  { %v2045_v34 = vpop.f32.mrf.mxu1 }
 0xf8f   :  { %2050 = vrot.lane.b32.xlu1 %v2045_v34, %s3528_s9  ;;  %2053 = vrot.lane.b32.xlu0 %v2045_v34, %s3527_s5 }
 0xf90   :  { %v3425_v35 = vpop.f32.mrf.mxu1 }
 0xf93   :  { %2060 = vperm.xlu0 %3521, %v3846_v41  }
0x1001   :  { %v2054_v45 = vpop.permute.xlu0 %2053  ;;  %v2051_v5 = vpop.permute.xlu1 %2050 }
0x1002   :  { %3427 = vmatpush3.msra.mxu0 %v2054_v45 }
0x1003   :  { %3428 = vmatprep.subr.mxu0 %v3522_v0 }
0x1004   :  { %3429 = vmatpush3.msra.mxu0 %v2051_v5 }
0x1005   :  { %3430 = vmatprep.subr.mxu0 %v3522_v0 }
0x1006   :  { %3431 = vmatpush3.msra.mxu0 %v2045_v34 }
0x1007   :  { %3433 = vmatmul.mubr.msk.f32.vlgmr.msra.gmra.mxu0 %vm186_vm2, %v3853_v44  ;;  %3440 = vmatprep.subr.mxu0 %v3522_v0 }
0x1008   :  { %3446 = vmatprep.mubr.msk.f32.mxu0 %vm3523_vm0, %v3522_v0 }
0x100e   :  { %v2061_v41 = vpop.permute.xlu0 %2060 }
0x104c   :  { %v1973_v36 = vpop.f32.mrf.mxu0 }
0x104e   :  { %v3418_v6 = vpop.f32.mrf.mxu0 }
0x10c7   :  { %v2132_v15 = vpop.f32.mrf.mxu0 }
0x10c8   :  { %v2133_v22 = vadd.f32 %v2132_v15, %v2061_v41 }
0x10c9   :  { %v3434_v23 = vpop.f32.mrf.mxu0 }
0x10ca   :  { %v2136_v28 = vmax.f32 %v2133_v22, 0.0 }
0x10cc   :  { %3438 = vmatmul.mubr.msk.f32.vlgmr.msra.gmra.mxu1 %vm431_vm5, %v2136_v28 }
0x10cd   :  { %3450 = vmatpush3.msra.mxu1 %v3905_v61  ;;  %3451 = vmatprep.mubr.msk.f32.mxu1 %vm3523_vm0, %v3522_v0 }
0x118c   :  { %v2207_v44 = vpop.f32.mrf.mxu1 }
0x118d   :  { %2212 = vrot.lane.b32.xlu0 %v2207_v44, %s3528_s9  ;;  %2215 = vrot.lane.b32.xlu1 %v2207_v44, %s3527_s5 }
0x118e   :  { %v3439_v29 = vpop.f32.mrf.mxu1 }
0x1191   :  { %1901 = vperm.xlu0 %3521, %v3876_v55   ;;  %2222 = vperm.xlu1 %3520, %v3881_v56  }
0x11ff   :  { %v2216_v32 = vpop.permute.xlu1 %2215  ;;  %v2213_v33 = vpop.permute.xlu0 %2212 }
0x1200   :  { %3441 = vmatpush3.msra.mxu0 %v2216_v32 }
0x1201   :  { %3442 = vmatprep.subr.mxu0 %v3522_v0 }
0x1202   :  { %3443 = vmatpush3.msra.mxu0 %v2213_v33 }
0x1203   :  { %3444 = vmatprep.subr.mxu0 %v3522_v0 }
0x1204   :  { %3445 = vmatpush3.msra.mxu0 %v2207_v44 }
0x1205   :  { %3447 = vmatmul.mubr.msk.f32.vlgmr.msra.gmra.mxu0 %vm186_vm2, %v3889_v59  ;;  %3459 = vmatprep.subr.mxu0 %v3522_v0 }
0x1206   :  { %3460 = vmatpush3.msra.mxu0 %v3900_v60  ;;  %3461 = vmatprep.mubr.msk.f32.mxu0 %vm3523_vm0, %v3522_v0 }
0x120c   :  { %v1902_v55 = vpop.permute.xlu0 %1901  ;;  %v2223_v56 = vpop.permute.xlu1 %2222 }
0x120d   :  { %v1974_v43 = vadd.f32 %v1973_v36, %v1902_v55 }
0x12c5   :  { %v2294_v61 = vpop.f32.mrf.mxu0 }
0x12c6   :  { %v2295_v38 = vadd.f32 %v2294_v61, %v2223_v56 }
0x12c7   :  { %v3448_v42 = vpop.f32.mrf.mxu0 }
0x12c8   :  { %v2298_v46 = vmax.f32 %v2295_v38, 0.0 }
0x12ca   :  { %v2299_v16 = vadd.f32 %v2298_v46, %v1974_v43 }
0x12cc   :  { %3452 = vmatmul.mubr.msk.f32.vlgmr.msra.gmra.mxu1 %vm431_vm5, %v2299_v16  ;;  %3462 = vmatmul.mubr.msk.f32.vlgmr.msra.gmra.mxu0 %vm431_vm5, %v2299_v16 }
0x12cd   :  { %3456 = vmatprep.mubr.msk.f32.mxu1 %vm431_vm5, %v3914_v21 }
0x138c   :  { %v2370_v59 = vpop.f32.mrf.mxu1  ;;  %v2536_v60 = vpop.f32.mrf.mxu0 }
0x138d   :  { %2541 = vrot.lane.b32.xlu0 %v2536_v60, %s3529_s6  ;;  %2544 = vrot.lane.b32.xlu1 %v2536_v60, %s3528_s9 }
0x138e   :  { %3454 = vmatprep.subr.mxu1 %v2370_v59  ;;  %v3453_v17 = vpop.f32.mrf.mxu1  ;;  %v3463_v39 = vpop.f32.mrf.mxu0 }
0x138f   :  { %3455 = vmatpush3.msra.mxu1 %v2370_v59 }
0x1390   :  { %3457 = vmatmul.mubr.msk.f32.vlgmr.msra.gmra.mxu1 %vm431_vm5, %v3921_v24  ;;  %v2644_v24 = vld [vmem:[%s4268_s19] sm:$0xf] }
0x1391   :  { %2558 = vperm.xlu0 %3521, %v3933_v30   ;;  %2553 = vperm.xlu1 %3520, %v3938_v31  }
0x1392   :  { %3470 = vmatprep.mubr.msk.f32.mxu1 %vm186_vm2, %v3927_v25  ;;  %3473 = vmatprep.subr.msk.mxu0 %vm1180_vm6, %v2644_v24 }
0x1393   :  { %3474 = vmatpush3.msk.msra.mxu0 %vm1180_vm6, %v2644_v24 }
0x13ff   :  { %v2545_v21 = vpop.permute.xlu1 %2544  ;;  %v2542_v47 = vpop.permute.xlu0 %2541 }
0x1400   :  { %3464 = vmatprep.subr.mxu1 %v2545_v21 }
0x1401   :  { %3465 = vmatpush3.msra.mxu1 %v2545_v21 }
0x1402   :  { %3466 = vmatprep.subr.mxu1 %v2542_v47 }
0x1403   :  { %3467 = vmatpush3.msra.mxu1 %v2542_v47 }
0x1404   :  { %3468 = vmatprep.subr.mxu1 %v2536_v60 }
0x1405   :  { %3469 = vmatpush3.msra.mxu1 %v2536_v60 }
0x1406   :  { %3471 = vmatmul.mubr.msk.f32.vlgmr.msra.gmra.mxu1 %vm186_vm2, %v3949_v37 }
0x1407   :  { %3501 = vmatprep.mubr.msk.f32.mxu1 %vm265_vm3, %v4041_v40 }
0x140c   :  { %v2559_v18 = vpop.permute.xlu0 %2558  ;;  %v2554_v19 = vpop.permute.xlu1 %2553 }
0x1450   :  { %v3458_v25 = vpop.f32.mrf.mxu1 }
0x1452   :  { %v2460_v30 = vpop.f32.mrf.mxu1 }
0x14c6   :  { %v3472_v31 = vpop.f32.mrf.mxu1 }
0x14c7   :  { %v2639_v49 = vadd.f32 %v3472_v31, %v2559_v18 }
0x14c8   :  { %v2633_v50 = vpop.f32.mrf.mxu1 }
0x14c9   :  { %v2634_v53 = vadd.f32 %v2633_v50, %v2554_v19  ;;  %v2643_v20 = vmax.f32 %v2639_v49, 0.0 }
0x14cb   :  { %v2642_v37 = vmax.f32 %v2634_v53, 0.0 }
0x14cd   :  { %3475 = vmatprep.mubr.msk.f32.mxu0 %vm1173_vm7, %v2642_v37 }
0x14ce   :  { %3476 = vmatmul.mubr.msk.f32.vlgmr.msra.gmra.mxu0 %vm1173_vm7, %v2643_v20 }
0x14cf   :  { %3490 = vmatprep.mubr.msk.f32.mxu0 %vm1287_vm8, %v3967_v52 }
0x158e   :  { %v3477_v40 = vpop.f32.mrf.mxu0 }
0x158f   :  { %2739 = vrot.lane.b32.xlu1 %v3477_v40, %s3528_s9 }
0x1590   :  { %v2720_v11 = vpop.f32.mrf.mxu0 }
0x1591   :  { %2737 = vrot.lane.b32.xlu0 %v2720_v11, %s3528_s9 }
0x1593   :  { %2733 = vrot.lane.b32.xlu1 %v3477_v40, %s3529_s6 }
0x1595   :  { %2731 = vrot.lane.b32.xlu0 %v2720_v11, %s3529_s6 }
0x1597   :  { %2754 = vperm.xlu1 %3520, %v3977_v57  }
0x1599   :  { %2385 = vperm.xlu0 %3521, %v3983_v58  }
0x159b   :  { %2749 = vperm.xlu1 %3520, %v3989_v62  }
0x159d   :  { %2380 = vperm.xlu0 %3521, %v3995_v63  }
0x1601   :  { %v2740_v9 = vpop.permute.xlu1 %2739 }
0x1602   :  { %3478 = vmatprep.subr.mxu0 %v2740_v9 }
0x1603   :  { %3479 = vmatpush3.msra.mxu0 %v2740_v9  ;;  %v2738_v52 = vpop.permute.xlu0 %2737 }
0x1604   :  { %3480 = vmatprep.subr.mxu0 %v2738_v52 }
0x1605   :  { %v2734_v12 = vpop.permute.xlu1 %2733  ;;  %3481 = vmatpush3.msra.mxu0 %v2738_v52 }
0x1606   :  { %3482 = vmatprep.subr.mxu0 %v2734_v12 }
0x1607   :  { %3483 = vmatpush3.msra.mxu0 %v2734_v12  ;;  %v2732_v2 = vpop.permute.xlu0 %2731 }
0x1608   :  { %3484 = vmatprep.subr.mxu0 %v2732_v2 }
0x1609   :  { %3485 = vmatpush3.msra.mxu0 %v2732_v2 }
0x160a   :  { %3486 = vmatprep.subr.mxu0 %v3477_v40 }
0x160b   :  { %3487 = vmatpush3.msra.mxu0 %v3477_v40 }
0x160c   :  { %3488 = vmatprep.subr.mxu0 %v2720_v11 }
0x160d   :  { %3489 = vmatpush3.msra.mxu0 %v2720_v11 }
0x160e   :  { %3491 = vmatmul.mubr.msk.f32.vlgmr.msra.gmra.mxu0 %vm1287_vm8, %v4002_v14 }
0x1612   :  { %v2755_v57 = vpop.permute.xlu1 %2754 }
0x1614   :  { %v2386_v58 = vpop.permute.xlu0 %2385 }
0x1615   :  { %v2466_v34 = vadd.f32 %v3458_v25, %v2386_v58 }
0x1616   :  { %v2750_v63 = vpop.permute.xlu1 %2749 }
0x1618   :  { %v2381_v26 = vpop.permute.xlu0 %2380 }
0x1619   :  { %v2461_v5 = vadd.f32 %v2460_v30, %v2381_v26 }
0x16ce   :  { %v3492_v62 = vpop.f32.mrf.mxu0 }
0x16cf   :  { %v2835_v3 = vadd.f32 %v3492_v62, %v2755_v57 }
0x16d0   :  { %v2829_v27 = vpop.f32.mrf.mxu0 }
0x16d1   :  { %v2839_v35 = vmax.f32 %v2835_v3, 0.0  ;;  %v2830_v45 = vadd.f32 %v2829_v27, %v2750_v63 }
0x16d3   :  { %v2838_v36 = vmax.f32 %v2830_v45, 0.0  ;;  %v2841_v6 = vadd.f32 %v2839_v35, %v2466_v34 }
0x16d5   :  { %v2851_v41 = vsel %vm1173_vm7, %v2841_v6, 0.0  ;;  %v2840_v15 = vadd.f32 %v2838_v36, %v2461_v5  ;;  %v2845_v23 = vsel %vm1173_vm7, %v2841_v6, -inf }
0x16d6   :  { %2852 = vadd.xlane.f32.xlu1 %v2851_v41 }
0x16d7   :  { %v2848_v22 = vsel %vm1173_vm7, %v2840_v15, 0.0  ;;  %v2842_v14 = vsel %vm1173_vm7, %v2840_v15, -inf }
0x16d8   :  { %2849 = vadd.xlane.f32.xlu0 %v2848_v22 }
0x16da   :  { %2843 = vmax.xlane.f32.xlu1 %v2842_v14 }
0x16dc   :  { %2846 = vmax.xlane.f32.xlu0 %v2845_v23 }
0x175f   :  { %v2853_v28 = vpop.xlane.xlu1 %2852 }
0x1760   :  { %v2855_v44 = vmul.f32 0.25, %v2853_v28 }
0x1761   :  { %v2850_v29 = vpop.xlane.xlu0 %2849 }
0x1762   :  { %v2863_v32 = vmul.f32 %v2855_v44, %v4050_v48  ;;  %v2854_v33 = vmul.f32 0.25, %v2850_v29 }
0x1763   :  { %v2844_v55 = vpop.xlane.xlu1 %2843 }
0x1764   :  { %v2862_v56 = vmul.f32 %v2854_v33, %v4055_v51  ;;  %v2871_v61 = vadd.f32 %v2863_v32, %v4060_v54  ;;  %v2860_v42 = vmul.f32 %v2844_v55, %v4066_v10 }
0x1765   :  { %v2847_v38 = vpop.xlane.xlu0 %2846 }
0x1766   :  { %v2861_v43 = vmul.f32 %v2847_v38, %v4071_v13  ;;  %3493 = vmatprep.subr.mxu1 %v2871_v61  ;;  %v2870_v46 = vadd.f32 %v2862_v56, %v4076_v1  ;;  %v2868_v48 = vadd.f32 %v2860_v42, %v4091_v7  ;;  %v2957_v1 = vld [vmem:[%s4275_s26] sm:$0x1f] }
0x1767   :  { %3494 = vmatpush3.msra.mxu1 %v2871_v61 }
0x1768   :  { %v2869_v16 = vadd.f32 %v2861_v43, %v4083_v4  ;;  %3495 = vmatprep.subr.mxu1 %v2870_v46  ;;  %v2958_v4 = vld [vmem:[%s4276_s27] sm:$0x1f] }
0x1769   :  { %3496 = vmatpush3.msra.mxu1 %v2870_v46 }
0x176a   :  { %3497 = vmatprep.subr.mxu1 %v2869_v16 }
0x176b   :  { %3498 = vmatpush3.msra.mxu1 %v2869_v16 }
0x176c   :  { %3499 = vmatprep.subr.mxu1 %v2868_v48 }
0x176d   :  { %3500 = vmatpush3.msra.mxu1 %v2868_v48 }
0x176e   :  { %3502 = vmatmul.mubr.msk.f32.vlgmr.msra.gmra.mxu1 %vm265_vm3, %v4098_v8  ;;  %3504 = vmatprep.subr.mxu1 %v3522_v0 }
0x176f   :  { %3508 = vmatprep.mubr.msk.f32.mxu1 %vm3523_vm0, %v3522_v0 }
0x182e   :  { %v3503_v51 = vpop.f32.mrf.mxu1 }
0x182f   :  { %v2956_v54 = vmax.f32 %v3503_v51, 0.0 }
0x1830   :  { %v2946_v10 = vpop.f32.mrf.mxu1 }
0x1831   :  { %v2955_v13 = vmax.f32 %v2946_v10, 0.0  ;;  %3505 = vmatpush3.msra.mxu1 %v2956_v54 }
0x1832   :  { %3506 = vmatprep.subr.mxu1 %v3522_v0 }
0x1833   :  { %3507 = vmatpush3.msra.mxu1 %v2955_v13 }
0x1834   :  { %3509 = vmatmul.mubr.msk.f32.vlgmr.msra.gmra.mxu1 %vm350_vm4, %v2957_v1 }
0x18f4   :  { %v3028_v7 = vpop.f32.mrf.mxu1 }
0x18f5   :  { %v3029_v8 = vadd.f32 %v3028_v7, %v2958_v4 }
0x18f6   :  { %v3510_v59 = vpop.f32.mrf.mxu1 }
0x18f7   :  { %3033 = vrot.lane.b32.xlu0 %v3029_v8, %s3530_s1 }
0x1969   :  { %v3034_v60 = vpop.permute.xlu0 %3033 }
0x196a   :  { %3037 = vst.msk [vmem:[%s4277_s28] sm:$0x1f] %vm3036_vm10, %v3034_v60 }

</bundles_post_ra>
